<compile_context>
chip_gen: v6e
topology: v6e:2x2x1
jax: 0.10.0
libtpu: 0.0.40
codegen_flags: <defaults>
</compile_context>

<pallas_src>
import functools

import jax
import jax.numpy as jnp
from jax.experimental import pallas as pl
from jax.experimental.pallas import tpu as pltpu


# ------------------------------ fused kernel ------------------------------- #

def _bottleneck_kernel(x_ref, xtop_ref, xbot_ref, w1_ref, w2_ref, w3_ref,
                       b1_ref, b2_ref, b3_ref, o_ref, *, TH, W):
    t = pl.program_id(1)
    HT = pl.num_programs(1)

    Cin = x_ref.shape[-1]
    Pn = w1_ref.shape[-1]
    Cout = o_ref.shape[-1]

    # ---- assemble the (TH+2, W, Cin) row tile: top halo | center | bottom -- #
    xc = x_ref[0]                                             # (TH, W, Cin) bf16
    xt = jnp.concatenate([xtop_ref[0], xc, xbot_ref[0]], axis=0)

    # ---- conv1 (1x1) + bn1 + relu over all TH+2 rows in ONE matmul --------- #
    h1 = jnp.dot(xt.reshape((TH + 2) * W, Cin), w1_ref[...],
                 preferred_element_type=jnp.float32)
    h1 = jnp.maximum(h1 + b1_ref[...], 0.0).reshape(TH + 2, W, Pn)

    # Halo rows outside the image must contribute zeros to conv2 (zero pad).
    # The halo BlockSpecs clamp to valid rows, so data is always defined;
    # we only mask the semantics here.
    rid = jax.lax.broadcasted_iota(jnp.int32, (TH + 2, 1, 1), 0)
    row_ok = jnp.logical_and(jnp.logical_or(rid > 0, t > 0),
                             jnp.logical_or(rid < TH + 1, t < HT - 1))
    h1 = jnp.where(row_ok, h1, 0.0).astype(jnp.bfloat16)      # (TH+2, W, Pn)

    # ---- conv2 (3x3, pad=1) + bn2 + relu: 3 accumulated matmuls over kh ---- #
    # W-shifted taps (kw-1 / kw+1) with zero columns at the image borders.
    # TODO(synk): a pltpu.roll sublane rotate + column mask would move these
    #             shifts to the (idle) XLU slot; kept as slices for robustness.
    zcol = jnp.zeros((TH + 2, 1, Pn), jnp.bfloat16)
    h1_m = jnp.concatenate([zcol, h1[:, :W - 1, :]], axis=1)  # tap at w-1 (kw=0)
    h1_p = jnp.concatenate([h1[:, 1:, :], zcol], axis=1)      # tap at w+1 (kw=2)
    taps = jnp.concatenate([h1_m, h1, h1_p], axis=-1)         # (TH+2, W, 3*Pn)

    h2 = b2_ref[...]                                          # (1, Pn) f32
    for kh in range(3):
        h2 = h2 + jnp.dot(taps[kh:kh + TH].reshape(TH * W, 3 * Pn),
                          w2_ref[kh], preferred_element_type=jnp.float32)
    h2 = jnp.maximum(h2, 0.0)

    # ---- conv3 (1x1) + bn3 + residual add + relu --------------------------- #
    y = jnp.dot(h2.astype(jnp.bfloat16), w3_ref[...],
                preferred_element_type=jnp.float32)
    res = xc.reshape(TH * W, Cin).astype(jnp.float32)
    y = jnp.maximum(y + b3_ref[...] + res, 0.0)
    o_ref[0] = y.reshape(TH, W, Cout).astype(o_ref.dtype)


# -------------------------------- wrapper ----------------------------------- #

def _fold_bn(w, conv_bias, gamma, beta, mean, var, eps=1e-5):
    """Fold conv bias + inference BatchNorm into (bf16 weight, f32 row bias).

    `w` is a f32 weight with the OUTPUT channel on the last axis.
    """
    scale = gamma / jnp.sqrt(var + eps)
    w_folded = (w.astype(jnp.float32) * scale).astype(jnp.bfloat16)
    bias = (beta + scale * (conv_bias - mean)).astype(jnp.float32)[None, :]
    return w_folded, bias


def _pick_tile_h(N, H, W, C, Pn, out_bytes, budget_bytes):
    """Largest divisor of H whose per-step working set fits the VMEM budget,
    preferring tiles that leave >= 2 grid steps (megacore / v7x's two TCs)."""

    def tile_bytes(th):
        act = 2                                      # bf16 activations
        b = 2 * th * W * C * act                     # x center block (dbl-buffered)
        b += 2 * 2 * W * C * act                     # two halo rows (dbl-buffered)
        b += 2 * th * W * C * out_bytes              # output block (dbl-buffered)
        b += (th + 2) * W * C * act                  # x concat temp
        b += (th + 2) * W * Pn * (4 + 2)             # h1 f32 + bf16
        b += (th + 2) * W * 3 * Pn * act             # taps buffer
        b += th * W * 3 * Pn * act                   # conv2 operand slice
        b += th * W * Pn * 4                         # h2 f32
        b += 2 * th * W * C * 4                      # y f32 + residual f32
        return b

    divisors = [d for d in range(1, H + 1) if H % d == 0]
    fits = [d for d in divisors if tile_bytes(d) <= budget_bytes] or [1]
    multi = [d for d in fits if N * (H // d) >= 2]
    return max(multi) if multi else max(fits)


def bottleneck_forward(x_nchw, p, out_dtype=jnp.bfloat16):
    """Bottleneck forward (stride=1, downsample=None). Input NCHW f32."""
    N, C, H, W = x_nchw.shape
    Pn = p["w1"].shape[0]
    if C != 4 * Pn:
        # TODO(synk): stride>1 / downsample projection path not implemented.
        raise NotImplementedError("identity residual requires inplanes == 4*planes")

    # NCHW -> NHWC (channels on the 128-wide lane axis), bf16 activations.
    x_nhwc = jnp.transpose(x_nchw, (0, 2, 3, 1)).astype(jnp.bfloat16)

    # Fold conv bias + BN into bf16 weights / f32 per-channel biases.
    w1, b1 = _fold_bn(p["w1"][:, :, 0, 0].T, p["b1"], *p["bn1"])            # (C, Pn)
    # (O, I, 3, 3) -> (kh, kw*I, O): tap order matches [w-1 | w | w+1] concat.
    w2_t = jnp.transpose(p["w2"], (2, 3, 1, 0)).reshape(3, 3 * Pn, Pn)
    w2, b2 = _fold_bn(w2_t, p["b2"], *p["bn2"])                             # (3,3Pn,Pn)
    w3, b3 = _fold_bn(p["w3"][:, :, 0, 0].T, p["b3"], *p["bn3"])            # (Pn, C)

    out_bytes = jnp.dtype(out_dtype).itemsize
    TH = _pick_tile_h(N, H, W, C, Pn, out_bytes, budget_bytes=16 * 1024 * 1024)
    HT = H // TH

    flops = 2 * N * H * W * (C * Pn + 9 * Pn * Pn + Pn * C)
    bytes_accessed = (N * H * W * C * (2 + out_bytes)        # x in + out
                      + 2 * N * HT * W * C * 2               # halo-row re-reads
                      + (C * Pn + 9 * Pn * Pn + Pn * C) * 2)  # weights

    kernel = functools.partial(_bottleneck_kernel, TH=TH, W=W)
    out_nhwc = pl.pallas_call(
        kernel,
        out_shape=jax.ShapeDtypeStruct((N, H, W, C), out_dtype),
        grid_spec=pltpu.PrefetchScalarGridSpec(
            num_scalar_prefetch=0,
            grid=(N, HT),
            in_specs=[
                pl.BlockSpec((1, TH, W, C), lambda n, t: (n, t, 0, 0)),      # x tile
                pl.BlockSpec(                                                # top halo row
                    (1, 1, W, C),
                    lambda n, t: (n, jnp.maximum(t * TH - 1, 0), 0, 0)),
                pl.BlockSpec(                                                # bottom halo row
                    (1, 1, W, C),
                    lambda n, t: (n, jnp.minimum(t * TH + TH, H - 1), 0, 0)),
                pl.BlockSpec((C, Pn), lambda n, t: (0, 0)),                  # w1*s1
                pl.BlockSpec((3, 3 * Pn, Pn), lambda n, t: (0, 0, 0)),       # w2*s2
                pl.BlockSpec((Pn, C), lambda n, t: (0, 0)),                  # w3*s3
                pl.BlockSpec((1, Pn), lambda n, t: (0, 0)),                  # b1
                pl.BlockSpec((1, Pn), lambda n, t: (0, 0)),                  # b2
                pl.BlockSpec((1, C), lambda n, t: (0, 0)),                   # b3
            ],
            out_specs=pl.BlockSpec((1, TH, W, C), lambda n, t: (n, t, 0, 0)),
        ),
        compiler_params=pltpu.CompilerParams(
            dimension_semantics=("parallel", "parallel"),
            vmem_limit_bytes=32 * 1024 * 1024),
        cost_estimate=pl.CostEstimate(flops=flops, transcendentals=0,
                                      bytes_accessed=bytes_accessed),
    )(x_nhwc, x_nhwc, x_nhwc, w1, w2, w3, b1, b2, b3)

    # NHWC -> NCHW to match the PyTorch I/O contract (transpose stays in bf16).
    return jnp.transpose(out_nhwc, (0, 3, 1, 2))


# ------------------------- pure-JAX reference (f32) ------------------------- #

def bottleneck_reference(x, p, eps=1e-5):
    def conv(x, w, b, padding=0):
        y = jax.lax.conv_general_dilated(
            x, w, window_strides=(1, 1),
            padding=[(padding, padding), (padding, padding)],
            dimension_numbers=("NCHW", "OIHW", "NCHW"))
        return y + b[None, :, None, None]

    def bn(x, stats):
        gamma, beta, mean, var = stats
        return (gamma[None, :, None, None] * (x - mean[None, :, None, None])
                / jnp.sqrt(var[None, :, None, None] + eps)
                + beta[None, :, None, None])

    out = jax.nn.relu(bn(conv(x, p["w1"], p["b1"]), p["bn1"]))
    out = jax.nn.relu(bn(conv(out, p["w2"], p["b2"], padding=1), p["bn2"]))
    out = bn(conv(out, p["w3"], p["b3"]), p["bn3"])
    return jax.nn.relu(out + x)


# ---------------------------------- main ------------------------------------ #

def _make_params(key, inplanes, planes):
    ks = jax.random.split(key, 16)

    def bn_stats(k, c):
        k0, k1, k2, k3 = jax.random.split(k, 4)
        gamma = 1.0 + 0.1 * jax.random.normal(k0, (c,), jnp.float32)
        beta = 0.1 * jax.random.normal(k1, (c,), jnp.float32)
        mean = 0.1 * jax.random.normal(k2, (c,), jnp.float32)
        var = 0.5 + jnp.abs(jax.random.normal(k3, (c,), jnp.float32))
        return (gamma, beta, mean, var)

    return {
        "w1": 0.1 * jax.random.normal(ks[0], (planes, inplanes, 1, 1), jnp.float32),
        "b1": 0.1 * jax.random.normal(ks[1], (planes,), jnp.float32),
        "bn1": bn_stats(ks[2], planes),
        "w2": 0.1 * jax.random.normal(ks[3], (planes, planes, 3, 3), jnp.float32),
        "b2": 0.1 * jax.random.normal(ks[4], (planes,), jnp.float32),
        "bn2": bn_stats(ks[5], planes),
        "w3": 0.1 * jax.random.normal(ks[6], (planes * 4, planes, 1, 1), jnp.float32),
        "b3": 0.1 * jax.random.normal(ks[7], (planes * 4,), jnp.float32),
        "bn3": bn_stats(ks[8], planes * 4),
    }


if __name__ == "__main__":
    key = jax.random.PRNGKey(0)
    kx, kp = jax.random.split(key)

    N, H, W = 2, 16, 16
    planes = 4
    inplanes = planes * 4        # identity residual requires inplanes == 4*planes

    x = jax.random.normal(kx, (N, inplanes, H, W), jnp.float32)   # NCHW like PyTorch
    params = _make_params(kp, inplanes, planes)

    fwd = jax.jit(bottleneck_forward)
    out = jax.block_until_ready(fwd(x, params))
    ref = jax.block_until_ready(bottleneck_reference(x, params))

    assert out.shape == (N, 4 * planes, H, W), out.shape
    out_f32 = out.astype(jnp.float32)
    err = float(jnp.max(jnp.abs(out_f32 - ref)))
    # bf16 activations / folded-BN weights / bf16 output with f32 accumulation
    # vs. a pure-f32 reference.
    assert jnp.allclose(out_f32, ref, atol=5e-2, rtol=5e-2), err
    print("KERNEL_OK")
</pallas_src>

<mosaic_0001>
module attributes {stable_mosaic.version = 11 : i64} {
  func.func @_bottleneck_kernel(%arg0: i32, %arg1: i32, %arg2: memref<1x16x16x16xbf16, #tpu.memory_space<vmem>>, %arg3: memref<1x1x16x16xbf16, #tpu.memory_space<vmem>>, %arg4: memref<1x1x16x16xbf16, #tpu.memory_space<vmem>>, %arg5: memref<16x4xbf16, #tpu.memory_space<vmem>>, %arg6: memref<3x12x4xbf16, #tpu.memory_space<vmem>>, %arg7: memref<4x16xbf16, #tpu.memory_space<vmem>>, %arg8: memref<1x4xf32, #tpu.memory_space<vmem>>, %arg9: memref<1x4xf32, #tpu.memory_space<vmem>>, %arg10: memref<1x16xf32, #tpu.memory_space<vmem>>, %arg11: memref<1x16x16x16xbf16, #tpu.memory_space<vmem>>) attributes {dimension_semantics = [#tpu.dimension_semantics<parallel>, #tpu.dimension_semantics<parallel>], iteration_bounds = array<i64: 2, 1>, scalar_prefetch = 0 : i64, scratch_operands = 0 : i64, tpu.core_type = #tpu.core_type<tc>, window_params = [{transform_indices = @transform_0, window_bounds = array<i64: 1, 16, 16, 16>}, {transform_indices = @transform_1, window_bounds = array<i64: 1, 1, 16, 16>}, {transform_indices = @transform_2, window_bounds = array<i64: 1, 1, 16, 16>}, {pipeline_mode = #tpu.pipeline_mode<synchronous>, transform_indices = @transform_3, window_bounds = array<i64: 16, 4>}, {pipeline_mode = #tpu.pipeline_mode<synchronous>, transform_indices = @transform_4, window_bounds = array<i64: 3, 12, 4>}, {pipeline_mode = #tpu.pipeline_mode<synchronous>, transform_indices = @transform_5, window_bounds = array<i64: 4, 16>}, {pipeline_mode = #tpu.pipeline_mode<synchronous>, transform_indices = @transform_6, window_bounds = array<i64: 1, 4>}, {pipeline_mode = #tpu.pipeline_mode<synchronous>, transform_indices = @transform_7, window_bounds = array<i64: 1, 4>}, {pipeline_mode = #tpu.pipeline_mode<synchronous>, transform_indices = @transform_8, window_bounds = array<i64: 1, 16>}, {transform_indices = @transform_9, window_bounds = array<i64: 1, 16, 16, 16>}]} {
    %c0 = arith.constant 0 : index
    %c0_0 = arith.constant 0 : index
    %c0_1 = arith.constant 0 : index
    %c0_2 = arith.constant 0 : index
    %0 = vector.load %arg2[%c0, %c0_0, %c0_1, %c0_2] : memref<1x16x16x16xbf16, #tpu.memory_space<vmem>>, vector<1x16x16x16xbf16>
    %1 = vector.shape_cast %0 : vector<1x16x16x16xbf16> to vector<16x16x16xbf16>
    %c0_3 = arith.constant 0 : index
    %c0_4 = arith.constant 0 : index
    %c0_5 = arith.constant 0 : index
    %c0_6 = arith.constant 0 : index
    %2 = vector.load %arg3[%c0_3, %c0_4, %c0_5, %c0_6] : memref<1x1x16x16xbf16, #tpu.memory_space<vmem>>, vector<1x1x16x16xbf16>
    %3 = vector.shape_cast %2 : vector<1x1x16x16xbf16> to vector<1x16x16xbf16>
    %c0_7 = arith.constant 0 : index
    %c0_8 = arith.constant 0 : index
    %c0_9 = arith.constant 0 : index
    %c0_10 = arith.constant 0 : index
    %4 = vector.load %arg4[%c0_7, %c0_8, %c0_9, %c0_10] : memref<1x1x16x16xbf16, #tpu.memory_space<vmem>>, vector<1x1x16x16xbf16>
    %5 = vector.shape_cast %4 : vector<1x1x16x16xbf16> to vector<1x16x16xbf16>
    %6 = tpu.concatenate %3, %1, %5 in 0 : vector<1x16x16xbf16>, vector<16x16x16xbf16>, vector<1x16x16xbf16> -> vector<18x16x16xbf16>
    %7 = vector.shape_cast %6 : vector<18x16x16xbf16> to vector<288x16xbf16>
    %c0_11 = arith.constant 0 : index
    %c0_12 = arith.constant 0 : index
    %8 = vector.load %arg5[%c0_11, %c0_12] : memref<16x4xbf16, #tpu.memory_space<vmem>>, vector<16x4xbf16>
    %cst = arith.constant dense<0.000000e+00> : vector<288x4xf32>
    %9 = tpu.matmul %7, %8, %cst {dimension_numbers = #tpu.dot_dimension_numbers<[1], [0], [0], [1], [0, 0, 1, 1], [], []>} : vector<288x16xbf16>, vector<16x4xbf16>, vector<288x4xf32> -> vector<288x4xf32>
    %c0_13 = arith.constant 0 : index
    %c0_14 = arith.constant 0 : index
    %10 = vector.load %arg8[%c0_13, %c0_14] : memref<1x4xf32, #tpu.memory_space<vmem>>, vector<1x4xf32>
    %11 = vector.broadcast %10 : vector<1x4xf32> to vector<288x4xf32>
    %12 = arith.addf %9, %11 : vector<288x4xf32>
    %cst_15 = arith.constant 0.000000e+00 : f32
    %13 = vector.broadcast %cst_15 : f32 to vector<288x4xf32>
    %14 = arith.maximumf %12, %13 : vector<288x4xf32>
    %15 = vector.shape_cast %14 : vector<288x4xf32> to vector<18x16x4xf32>
    %16 = tpu.iota {dimensions = array<i32: 0>} : vector<18x1x1xi32>
    %c0_i32 = arith.constant 0 : i32
    %17 = vector.broadcast %c0_i32 : i32 to vector<18x1x1xi32>
    %18 = arith.cmpi sgt, %16, %17 : vector<18x1x1xi32>
    %c0_i32_16 = arith.constant 0 : i32
    %19 = arith.cmpi sgt, %arg1, %c0_i32_16 : i32
    %20 = vector.broadcast %19 : i1 to vector<18x1x1xi1>
    %21 = arith.ori %18, %20 : vector<18x1x1xi1>
    %c17_i32 = arith.constant 17 : i32
    %22 = vector.broadcast %c17_i32 : i32 to vector<18x1x1xi32>
    %23 = arith.cmpi slt, %16, %22 : vector<18x1x1xi32>
    %c0_i32_17 = arith.constant 0 : i32
    %24 = arith.cmpi slt, %arg1, %c0_i32_17 : i32
    %25 = vector.broadcast %24 : i1 to vector<18x1x1xi1>
    %26 = arith.ori %23, %25 : vector<18x1x1xi1>
    %27 = arith.andi %21, %26 : vector<18x1x1xi1>
    %cst_18 = arith.constant 0.000000e+00 : f32
    %28 = vector.shape_cast %27 : vector<18x1x1xi1> to vector<18x1x1xi1>
    %29 = vector.broadcast %28 : vector<18x1x1xi1> to vector<18x16x4xi1>
    %30 = vector.broadcast %cst_18 : f32 to vector<18x16x4xf32>
    %31 = arith.select %29, %15, %30 : vector<18x16x4xi1>, vector<18x16x4xf32>
    %32 = arith.truncf %31 : vector<18x16x4xf32> to vector<18x16x4xbf16>
    %cst_19 = arith.constant 0.000000e+00 : bf16
    %33 = vector.broadcast %cst_19 : bf16 to vector<18x1x4xbf16>
    %34 = vector.extract_strided_slice %32 {offsets = [0, 0, 0], sizes = [18, 15, 4], strides = [1, 1, 1]} : vector<18x16x4xbf16> to vector<18x15x4xbf16>
    %35 = tpu.concatenate %33, %34 in 1 : vector<18x1x4xbf16>, vector<18x15x4xbf16> -> vector<18x16x4xbf16>
    %36 = vector.extract_strided_slice %32 {offsets = [0, 1, 0], sizes = [18, 15, 4], strides = [1, 1, 1]} : vector<18x16x4xbf16> to vector<18x15x4xbf16>
    %37 = tpu.concatenate %36, %33 in 1 : vector<18x15x4xbf16>, vector<18x1x4xbf16> -> vector<18x16x4xbf16>
    %38 = tpu.concatenate %35, %32, %37 in 2 : vector<18x16x4xbf16>, vector<18x16x4xbf16>, vector<18x16x4xbf16> -> vector<18x16x12xbf16>
    %c0_20 = arith.constant 0 : index
    %c0_21 = arith.constant 0 : index
    %39 = vector.load %arg9[%c0_20, %c0_21] : memref<1x4xf32, #tpu.memory_space<vmem>>, vector<1x4xf32>
    %40 = vector.extract_strided_slice %38 {offsets = [0, 0, 0], sizes = [16, 16, 12], strides = [1, 1, 1]} : vector<18x16x12xbf16> to vector<16x16x12xbf16>
    %41 = vector.shape_cast %40 : vector<16x16x12xbf16> to vector<256x12xbf16>
    %c0_22 = arith.constant 0 : index
    %c0_23 = arith.constant 0 : index
    %c0_24 = arith.constant 0 : index
    %42 = vector.load %arg6[%c0_22, %c0_23, %c0_24] : memref<3x12x4xbf16, #tpu.memory_space<vmem>>, vector<1x12x4xbf16>
    %43 = vector.shape_cast %42 : vector<1x12x4xbf16> to vector<12x4xbf16>
    %cst_25 = arith.constant dense<0.000000e+00> : vector<256x4xf32>
    %44 = tpu.matmul %41, %43, %cst_25 {dimension_numbers = #tpu.dot_dimension_numbers<[1], [0], [0], [1], [0, 0, 1, 1], [], []>} : vector<256x12xbf16>, vector<12x4xbf16>, vector<256x4xf32> -> vector<256x4xf32>
    %45 = vector.broadcast %39 : vector<1x4xf32> to vector<256x4xf32>
    %46 = arith.addf %45, %44 : vector<256x4xf32>
    %47 = vector.extract_strided_slice %38 {offsets = [1, 0, 0], sizes = [16, 16, 12], strides = [1, 1, 1]} : vector<18x16x12xbf16> to vector<16x16x12xbf16>
    %48 = vector.shape_cast %47 : vector<16x16x12xbf16> to vector<256x12xbf16>
    %c1 = arith.constant 1 : index
    %c0_26 = arith.constant 0 : index
    %c0_27 = arith.constant 0 : index
    %49 = vector.load %arg6[%c1, %c0_26, %c0_27] : memref<3x12x4xbf16, #tpu.memory_space<vmem>>, vector<1x12x4xbf16>
    %50 = vector.shape_cast %49 : vector<1x12x4xbf16> to vector<12x4xbf16>
    %cst_28 = arith.constant dense<0.000000e+00> : vector<256x4xf32>
    %51 = tpu.matmul %48, %50, %cst_28 {dimension_numbers = #tpu.dot_dimension_numbers<[1], [0], [0], [1], [0, 0, 1, 1], [], []>} : vector<256x12xbf16>, vector<12x4xbf16>, vector<256x4xf32> -> vector<256x4xf32>
    %52 = arith.addf %46, %51 : vector<256x4xf32>
    %53 = vector.extract_strided_slice %38 {offsets = [2, 0, 0], sizes = [16, 16, 12], strides = [1, 1, 1]} : vector<18x16x12xbf16> to vector<16x16x12xbf16>
    %54 = vector.shape_cast %53 : vector<16x16x12xbf16> to vector<256x12xbf16>
    %c2 = arith.constant 2 : index
    %c0_29 = arith.constant 0 : index
    %c0_30 = arith.constant 0 : index
    %55 = vector.load %arg6[%c2, %c0_29, %c0_30] : memref<3x12x4xbf16, #tpu.memory_space<vmem>>, vector<1x12x4xbf16>
    %56 = vector.shape_cast %55 : vector<1x12x4xbf16> to vector<12x4xbf16>
    %cst_31 = arith.constant dense<0.000000e+00> : vector<256x4xf32>
    %57 = tpu.matmul %54, %56, %cst_31 {dimension_numbers = #tpu.dot_dimension_numbers<[1], [0], [0], [1], [0, 0, 1, 1], [], []>} : vector<256x12xbf16>, vector<12x4xbf16>, vector<256x4xf32> -> vector<256x4xf32>
    %58 = arith.addf %52, %57 : vector<256x4xf32>
    %cst_32 = arith.constant 0.000000e+00 : f32
    %59 = vector.broadcast %cst_32 : f32 to vector<256x4xf32>
    %60 = arith.maximumf %58, %59 : vector<256x4xf32>
    %61 = arith.truncf %60 : vector<256x4xf32> to vector<256x4xbf16>
    %c0_33 = arith.constant 0 : index
    %c0_34 = arith.constant 0 : index
    %62 = vector.load %arg7[%c0_33, %c0_34] : memref<4x16xbf16, #tpu.memory_space<vmem>>, vector<4x16xbf16>
    %cst_35 = arith.constant dense<0.000000e+00> : vector<256x16xf32>
    %63 = tpu.matmul %61, %62, %cst_35 {dimension_numbers = #tpu.dot_dimension_numbers<[1], [0], [0], [1], [0, 0, 1, 1], [], []>} : vector<256x4xbf16>, vector<4x16xbf16>, vector<256x16xf32> -> vector<256x16xf32>
    %64 = vector.shape_cast %1 : vector<16x16x16xbf16> to vector<256x16xbf16>
    %65 = arith.extf %64 : vector<256x16xbf16> to vector<256x16xf32>
    %c0_36 = arith.constant 0 : index
    %c0_37 = arith.constant 0 : index
    %66 = vector.load %arg10[%c0_36, %c0_37] : memref<1x16xf32, #tpu.memory_space<vmem>>, vector<1x16xf32>
    %67 = vector.broadcast %66 : vector<1x16xf32> to vector<256x16xf32>
    %68 = arith.addf %63, %67 : vector<256x16xf32>
    %69 = arith.addf %68, %65 : vector<256x16xf32>
    %cst_38 = arith.constant 0.000000e+00 : f32
    %70 = vector.broadcast %cst_38 : f32 to vector<256x16xf32>
    %71 = arith.maximumf %69, %70 : vector<256x16xf32>
    %72 = vector.shape_cast %71 : vector<256x16xf32> to vector<16x16x16xf32>
    %73 = arith.truncf %72 : vector<16x16x16xf32> to vector<16x16x16xbf16>
    %c0_39 = arith.constant 0 : index
    %c0_40 = arith.constant 0 : index
    %c0_41 = arith.constant 0 : index
    %c0_42 = arith.constant 0 : index
    %74 = vector.load %arg11[%c0_39, %c0_40, %c0_41, %c0_42] : memref<1x16x16x16xbf16, #tpu.memory_space<vmem>>, vector<1x16x16x16xbf16>
    %75 = vector.shape_cast %74 : vector<1x16x16x16xbf16> to vector<16x16x16xbf16>
    %76 = vector.shape_cast %73 : vector<16x16x16xbf16> to vector<1x16x16x16xbf16>
    tpu.vector_store %arg11[%c0_39, %c0_40, %c0_41, %c0_42], %76 {strides = array<i32>} : memref<1x16x16x16xbf16, #tpu.memory_space<vmem>>, vector<1x16x16x16xbf16>,
    return
  }
  func.func @transform_0(%arg0: i32, %arg1: i32) -> (i32, i32, i32, i32) {
    %c0_i32 = arith.constant 0 : i32
    %c0_i32_0 = arith.constant 0 : i32
    %c0_i32_1 = arith.constant 0 : i32
    return %arg0, %arg1, %c0_i32, %c0_i32_0 : i32, i32, i32, i32
  }
  func.func @transform_1(%arg0: i32, %arg1: i32) -> (i32, i32, i32, i32) {
    %c16_i32 = arith.constant 16 : i32
    %0 = arith.muli %arg1, %c16_i32 : i32
    %c1_i32 = arith.constant 1 : i32
    %1 = arith.subi %0, %c1_i32 : i32
    %c0_i32 = arith.constant 0 : i32
    %2 = arith.maxsi %1, %c0_i32 : i32
    %c0_i32_0 = arith.constant 0 : i32
    %c0_i32_1 = arith.constant 0 : i32
    %c0_i32_2 = arith.constant 0 : i32
    return %arg0, %2, %c0_i32_0, %c0_i32_1 : i32, i32, i32, i32
  }
  func.func @transform_2(%arg0: i32, %arg1: i32) -> (i32, i32, i32, i32) {
    %c16_i32 = arith.constant 16 : i32
    %0 = arith.muli %arg1, %c16_i32 : i32
    %c16_i32_0 = arith.constant 16 : i32
    %1 = arith.addi %0, %c16_i32_0 : i32
    %c15_i32 = arith.constant 15 : i32
    %2 = arith.minsi %1, %c15_i32 : i32
    %c0_i32 = arith.constant 0 : i32
    %c0_i32_1 = arith.constant 0 : i32
    %c0_i32_2 = arith.constant 0 : i32
    return %arg0, %2, %c0_i32, %c0_i32_1 : i32, i32, i32, i32
  }
  func.func @transform_3(%arg0: i32, %arg1: i32) -> (i32, i32) {
    %c0_i32 = arith.constant 0 : i32
    %c0_i32_0 = arith.constant 0 : i32
    %c0_i32_1 = arith.constant 0 : i32
    return %c0_i32, %c0_i32_0 : i32, i32
  }
  func.func @transform_4(%arg0: i32, %arg1: i32) -> (i32, i32, i32) {
    %c0_i32 = arith.constant 0 : i32
    %c0_i32_0 = arith.constant 0 : i32
    %c0_i32_1 = arith.constant 0 : i32
    %c0_i32_2 = arith.constant 0 : i32
    return %c0_i32, %c0_i32_0, %c0_i32_1 : i32, i32, i32
  }
  func.func @transform_5(%arg0: i32, %arg1: i32) -> (i32, i32) {
    %c0_i32 = arith.constant 0 : i32
    %c0_i32_0 = arith.constant 0 : i32
    %c0_i32_1 = arith.constant 0 : i32
    return %c0_i32, %c0_i32_0 : i32, i32
  }
  func.func @transform_6(%arg0: i32, %arg1: i32) -> (i32, i32) {
    %c0_i32 = arith.constant 0 : i32
    %c0_i32_0 = arith.constant 0 : i32
    %c0_i32_1 = arith.constant 0 : i32
    return %c0_i32, %c0_i32_0 : i32, i32
  }
  func.func @transform_7(%arg0: i32, %arg1: i32) -> (i32, i32) {
    %c0_i32 = arith.constant 0 : i32
    %c0_i32_0 = arith.constant 0 : i32
    %c0_i32_1 = arith.constant 0 : i32
    return %c0_i32, %c0_i32_0 : i32, i32
  }
  func.func @transform_8(%arg0: i32, %arg1: i32) -> (i32, i32) {
    %c0_i32 = arith.constant 0 : i32
    %c0_i32_0 = arith.constant 0 : i32
    %c0_i32_1 = arith.constant 0 : i32
    return %c0_i32, %c0_i32_0 : i32, i32
  }
  func.func @transform_9(%arg0: i32, %arg1: i32) -> (i32, i32, i32, i32) {
    %c0_i32 = arith.constant 0 : i32
    %c0_i32_0 = arith.constant 0 : i32
    %c0_i32_1 = arith.constant 0 : i32
    return %arg0, %arg1, %c0_i32, %c0_i32_0 : i32, i32, i32, i32
  }
}

</mosaic_0001>

<bundles_post_ra>
// kernel: bottleneck_forward.1
= control target key start
LH: loop header
LB: loop body
LE: loop exit
PB: predicated region body
PF: predicated region fallthrough
CT: control target
= control target key end

     0   :  { %s3361_s30 = smov 0   ;;  %s3363_s10 = smov 0   ;;  %s4083_s0 = inlined_call_operand.vmem [shape: bf16[2,16,16,16], index: 0, kind: input, shape index: {}, may-alias: {0,1,2}]   ;;  %s4084_s1 = inlined_call_operand.vmem [shape: bf16[2,16,16,16], index: 1, kind: input, shape index: {}, may-alias: {0,1,2}]   ;;  %s4085_s2 = inlined_call_operand.vmem [shape: bf16[2,16,16,16], index: 2, kind: input, shape index: {}, may-alias: {0,1,2}]   ;;  %s4086_s3 = inlined_call_operand.vmem [shape: bf16[16,4], index: 3, kind: input, shape index: {}]   ;;  %s4087_s4 = inlined_call_operand.vmem [shape: bf16[3,12,4], index: 4, kind: input, shape index: {}]   ;;  %s4088_s5 = inlined_call_operand.vmem [shape: bf16[4,16], index: 5, kind: input, shape index: {}]   ;;  %s4089_s6 = inlined_call_operand.vmem [shape: f32[1,4], index: 6, kind: input, shape index: {}]   ;;  %s4090_s7 = inlined_call_operand.vmem [shape: f32[1,4], index: 7, kind: input, shape index: {}]   ;;  %s4091_s8 = inlined_call_operand.vmem [shape: f32[1,16], index: 8, kind: input, shape index: {}]   ;;  %s4092_s9 = inlined_call_operand.vmem [shape: bf16[2,16,16,16], index: 9, kind: output, shape index: {}]  }
   0x1   :  { %s3365_s11 = smov 0  }
   0x2 LB: > { %s31_s12 = sadd.s32 1, %s3301_s10  ;;  %p2741_p0 = scmp.ge.s32.totalorder %s3305_s11, 1  ;;  %s3305_s11 = sphi %s3365_s11, %s19_s11   ;;  %s3301_s10 = sphi %s3363_s10, %s4098_s10   ;;  %s3297_s30 = sphi %s3361_s30, %s4097_s30  }
   0x3   : > { %p33_p1 = scmp.ge.s32.totalorder %s31_s12, 2  ;;  %p373_p2 = scmp.lt.s32.totalorder %s3305_s11, 3 }
   0x5   : > { %s4100_s12 = smov (%p33_p1, %s31_s12), 0  ;;  %p374_p3 = pnand %p2741_p0, %p373_p2 }
   0x6   : > { %p446_p4 = scmp.lt.s32.totalorder (!%p374_p3), %s3297_s30, 1  ;;  %s3308_s26 = smov (!%p374_p3), 4  }
   0x7   : > { %377 = sbr.rel (%p374_p3) target bundleno = 896 (0x380), region = 56  ;;  %s3310_s27 = smov (!%p374_p3), 8  }
   0xc   : > { %v3229_v0 = vld [vmem:[%s4086_s3] sm:$0xff]   ;;  %s4102_s30 = smov (!%p446_p4, %s3297_s30), 1  ;;  %vm643_vm0 = vcmask 130048   ;;  %v3307_v19 = vmov 0.0|0.0   ;;  %v3309_v20 = vmov 0   ;;  %vm1196_vm1 = vcmask 1047552  }
   0xd   : > { %3020 = vmatprep.subr.bf16.mxu0 %v3229_v0  ;;  %s3382_s15 = sshll.u32 %s4102_s30, 7  ;;  %1235 = vrot.lane.b32.xlu1 %v3307_v19, %s3308_s26  ;;  %v1142_v21 = vrot.slane %v3309_v20, 1  ;;  %vm1197_vm2 = vsmask.f32 7424  ;;  %v3248_v24 = vld [vmem:[%s4087_s4] sm:$0x3f]  }
   0xe   : > { %3021 = vmatpush3.bf16.msra.mxu0 %v3229_v0  ;;  %s3388_s18 = scalar_lea.vmem %s4083_s0, %s3382_s15  ;;  %s468_s21 = scalar_lea.vmem %s4084_s1, %s3382_s15  ;;  %vm3434_vm3 = vmand %vm1196_vm1, %vm1197_vm2  ;;  %vm1458_vm4 = vcmask 1045504   ;;  %v980_v26 = vrot.slane %v3309_v20, 7  ;;  %vm1121_vm5 = vcmask 1040384   ;;  %vm1122_vm6 = vsmask.f32 256 }
   0xf   : > { %v3230_v1 = vld [vmem:[%s468_s21] sm:$0xff]   ;;  %v504_v3 = vld [vmem:[%s3388_s18 + $0x8] sm:$0xff]   ;;  %s2898_s22 = sadd.s32 120, %s3382_s15  ;;  %v506_v4 = vld [vmem:[%s3388_s18 + $0x10] sm:$0xff]   ;;  %v3440_v23 = vsel %vm3434_vm3, %v1142_v21, 0  ;;  %3196 = vmatprep.subr.msk.bf16.mxu0 %vm1458_vm4, %v3248_v24  ;;  %v1460_v25 = vsel %vm1458_vm4, %v3248_v24, 0  ;;  %3197 = vmatprep.subr.msk.bf16.mxu1 %vm1458_vm4, %v3248_v24  ;;  %s3965_s28 = scalar_lea.vmem %s4092_s9, %s3382_s15 }
  0x10   : > { %v502_v2 = vld [vmem:[%s3388_s18] sm:$0xff]   ;;  %3022 = vmatprep.mubr.msk.bf16.mxu0 %vm643_vm0, %v3230_v1  ;;  %s485_s25 = scalar_lea.vmem %s4085_s2, %s2898_s22  ;;  %v508_v5 = vld [vmem:[%s3388_s18 + $0x18] sm:$0xff]   ;;  %v512_v7 = vld [vmem:[%s3388_s18 + $0x28] sm:$0xff]   ;;  %1289 = vrot.lane.b32.xlu0 %v3440_v23, %s3310_s27  ;;  %vm1325_vm8 = vcmask 31744   ;;  %vm1380_vm9 = vcmask 64512   ;;  %vm1425_vm10 = vcmask 97280  }
  0x11   : > { %3023 = vmatmul.mubr.msk.bf16.vlgmr.msra.gmra.mxu0 %vm643_vm0, %v502_v2  ;;  %v510_v6 = vld [vmem:[%s3388_s18 + $0x20] sm:$0xff]   ;;  %v514_v8 = vld [vmem:[%s3388_s18 + $0x30] sm:$0xff]   ;;  %v516_v9 = vld [vmem:[%s3388_s18 + $0x38] sm:$0xff]   ;;  %3195 = vmatpush3.bf16.msra.mxu1 %v1460_v25  ;;  %vm2209_vm11 = vcmask 1041408   ;;  %vm2566_vm12 = vcmask 125952  }
  0x12   : > { %3026 = vmatprep.mubr.msk.bf16.mxu0 %vm643_vm0, %v504_v3  ;;  %v518_v10 = vld [vmem:[%s3388_s18 + $0x40] sm:$0xff]   ;;  %v520_v11 = vld [vmem:[%s3388_s18 + $0x48] sm:$0xff]   ;;  %v522_v12 = vld [vmem:[%s3388_s18 + $0x50] sm:$0xff]   ;;  %3059 = vmatpush3.bf16.msra.mxu0 %v1460_v25 }
  0x13   : > { %v524_v13 = vld [vmem:[%s3388_s18 + $0x58] sm:$0xff]   ;;  %v526_v14 = vld [vmem:[%s3388_s18 + $0x60] sm:$0xff]   ;;  %v528_v15 = vld [vmem:[%s3388_s18 + $0x68] sm:$0xff]  }
  0x14   : > { %v530_v16 = vld [vmem:[%s3388_s18 + $0x70] sm:$0xff]   ;;  %v532_v17 = vld [vmem:[%s3388_s18 + $0x78] sm:$0xff]   ;;  %v3247_v18 = vld [vmem:[%s485_s25] sm:$0xff]  }
  0x15   : > { %vm3450_vm7 = vmand %vm1121_vm5, %vm1122_vm6  ;;  %v3461_v30 = vld [vmem:[%s4089_s6] ss:$0 sm:$0xff] }
  0x16   : > { %v3456_v28 = vsel %vm3450_vm7, 0, %v980_v26 }
  0x19   : > { %3027 = vmatmul.mubr.msk.bf16.gmra.mxu0 %vm643_vm0, %v506_v4 }
  0x1a   : > { %3030 = vmatprep.mubr.msk.bf16.mxu0 %vm643_vm0, %v508_v5 }
  0x21   : > { %3031 = vmatmul.mubr.msk.bf16.gmra.mxu0 %vm643_vm0, %v510_v6 }
  0x22   : > { %3034 = vmatprep.mubr.msk.bf16.mxu0 %vm643_vm0, %v512_v7 }
  0x29   : > { %3035 = vmatmul.mubr.msk.bf16.gmra.mxu0 %vm643_vm0, %v514_v8 }
  0x2a   : > { %3038 = vmatprep.mubr.msk.bf16.mxu0 %vm643_vm0, %v516_v9 }
  0x31   : > { %3039 = vmatmul.mubr.msk.bf16.gmra.mxu0 %vm643_vm0, %v518_v10 }
  0x32   : > { %3042 = vmatprep.mubr.msk.bf16.mxu0 %vm643_vm0, %v520_v11 }
  0x39   : > { %3043 = vmatmul.mubr.msk.bf16.gmra.mxu0 %vm643_vm0, %v522_v12 }
  0x3a   : > { %3046 = vmatprep.mubr.msk.bf16.mxu0 %vm643_vm0, %v524_v13 }
  0x41   : > { %3047 = vmatmul.mubr.msk.bf16.gmra.mxu0 %vm643_vm0, %v526_v14 }
  0x42   : > { %3050 = vmatprep.mubr.msk.bf16.mxu0 %vm643_vm0, %v528_v15 }
  0x49   : > { %3051 = vmatmul.mubr.msk.bf16.gmra.mxu0 %vm643_vm0, %v530_v16 }
  0x4a   : > { %3054 = vmatprep.mubr.msk.bf16.mxu0 %vm643_vm0, %v532_v17 }
  0x51   : > { %3055 = vmatmul.mubr.msk.bf16.gmra.mxu0 %vm643_vm0, %v3247_v18 }
  0x7f   : > { %v1236_v31 = vpop.permute.xlu1 %1235 }
  0x80   : > { %v1328_v32 = vsel %vm1325_vm8, %v3456_v28, %v1236_v31 }
  0x82   : > { %v1290_v35 = vpop.permute.xlu0 %1289 }
  0x83   : > { %v1382_v37 = vsel %vm1380_vm9, %v1328_v32, %v1290_v35 }
  0x84   : > { %3060 = vmatprep.mubr.msk.bf16.mxu0 %vm1425_vm10, %v1382_v37 }
  0xd1   : > { %v3024_v29 = vpop.f32.mrf.mxu0 }
  0xd2   : > { %v741_v34 = vadd.f32 %v3024_v29, %v3461_v30 }
  0xd3   : > { %v732_v33 = vpop.f32.mrf.mxu0 }
  0xd4   : > { %v877_v40 = vmax.f32 %v741_v34, 0.0 }
  0xd5   : > { %v3025_v36 = vpop.f32.mrf.mxu0 }
  0xd6   : > { %v744_v38 = vadd.f32 %v3025_v36, %v3461_v30 }
  0xd7   : > { %v735_v39 = vpop.f32.mrf.mxu0 }
  0xd8   : > { %v878_v41 = vmax.f32 %v744_v38, 0.0 }
  0xd9   : > { %v3028_v42 = vpop.f32.mrf.mxu0 }
  0xda   : > { %v960_v43 = vpack.c.bf16 %v878_v41, %v877_v40  ;;  %v757_v44 = vadd.f32 %v3028_v42, %v3461_v30 }
  0xdb   : > { %v748_v45 = vpop.f32.mrf.mxu0 }
  0xdc   : > { %v988_v46 = vshll.u32 %v960_v43, 16  ;;  %1237 = vrot.lane.b32.xlu1 %v960_v43, %s3308_s26  ;;  %v985_v47 = vshrl.u32 %v960_v43, 16  ;;  %v749_v49 = vadd.f32 %v3461_v30, %v748_v45  ;;  %v881_v53 = vmax.f32 %v757_v44, 0.0 }
  0xdd   : > { %v3029_v48 = vpop.f32.mrf.mxu0 }
  0xde   : > { %v760_v50 = vadd.f32 %v3029_v48, %v3461_v30  ;;  %v1144_v51 = vrot.slane %v988_v46, 1  ;;  %v987_v52 = vrot.slane %v985_v47, 7  ;;  %v879_v60 = vmax.f32 %v749_v49, 0.0 }
  0xdf   : > { %v751_v54 = vpop.f32.mrf.mxu0 }
  0xe0   : > { %v882_v55 = vmax.f32 %v760_v50, 0.0  ;;  %v752_v56 = vadd.f32 %v3461_v30, %v751_v54  ;;  %v1145_v57 = vor.u32 %v1144_v51, %v985_v47  ;;  %v3474_v58 = vor.u32 %v988_v46, %v987_v52 }
  0xe1   : > { %v3032_v59 = vpop.f32.mrf.mxu0 }
  0xe2   : > { %v3476_v61 = vpack.c.bf16 %v882_v55, %v881_v53  ;;  %v880_v62 = vmax.f32 %v752_v56, 0.0  ;;  %v1200_v63 = vsel %vm3434_vm3, %v1145_v57, 0  ;;  %v773_v2 = vadd.f32 %v3032_v59, %v3461_v30 }
  0xe3   : > { %1291 = vrot.lane.b32.xlu1 %v1200_v63, %s3310_s27  ;;  %v764_v0 = vpop.f32.mrf.mxu0 }
  0xe4   : > { %v961_v1 = vpack.c.bf16 %v880_v62, %v879_v60  ;;  %v999_v4 = vshrl.u32 %v3476_v61, 16  ;;  %v765_v5 = vadd.f32 %v3461_v30, %v764_v0  ;;  %v1002_v8 = vshll.u32 %v3476_v61, 16 }
  0xe5   : > { %v3033_v3 = vpop.f32.mrf.mxu0  ;;  %v885_v11 = vmax.f32 %v773_v2, 0.0 }
  0xe6   : > { %v776_v6 = vadd.f32 %v3033_v3, %v3461_v30  ;;  %v992_v7 = vshrl.u32 %v961_v1, 16  ;;  %v1001_v10 = vrot.slane %v999_v4, 7  ;;  %v995_v15 = vshll.u32 %v961_v1, 16 }
  0xe7   : > { %v767_v9 = vpop.f32.mrf.mxu0  ;;  %1239 = vrot.lane.b32.xlu1 %v961_v1, %s3308_s26  ;;  %v883_v18 = vmax.f32 %v765_v5, 0.0 }
  0xe8   : > { %v886_v12 = vmax.f32 %v776_v6, 0.0  ;;  %v768_v13 = vadd.f32 %v3461_v30, %v767_v9  ;;  %v994_v14 = vrot.slane %v992_v7, 7  ;;  %v3492_v17 = vor.u32 %v1002_v8, %v1001_v10 }
  0xe9   : > { %v3036_v16 = vpop.f32.mrf.mxu0  ;;  %v1146_v50 = vrot.slane %v995_v15, 1 }
  0xea   : > { %v3494_v20 = vpack.c.bf16 %v886_v12, %v885_v11  ;;  %v884_v21 = vmax.f32 %v768_v13, 0.0  ;;  %v3496_v25 = vor.u32 %v995_v15, %v994_v14  ;;  %v789_v29 = vadd.f32 %v3036_v16, %v3461_v30 }
  0xeb   : > { %v780_v24 = vpop.f32.mrf.mxu0  ;;  %v1147_v1 = vor.u32 %v1146_v50, %v992_v7 }
  0xec   : > { %v3498_v26 = vpack.c.bf16 %v884_v21, %v883_v18  ;;  %v1013_v32 = vshrl.u32 %v3494_v20, 16  ;;  %v781_v33 = vadd.f32 %v3461_v30, %v780_v24  ;;  %v1016_v35 = vshll.u32 %v3494_v20, 16 }
  0xed   : > { %v3037_v31 = vpop.f32.mrf.mxu0  ;;  %v889_v39 = vmax.f32 %v789_v29, 0.0  ;;  %v1201_v24 = vsel %vm3434_vm3, %v1147_v1, 0 }
  0xee   : > { %v792_v34 = vadd.f32 %v3037_v31, %v3461_v30  ;;  %v1015_v37 = vrot.slane %v1013_v32, 7  ;;  %v1006_v38 = vshrl.u32 %v3498_v26, 16  ;;  %v1009_v42 = vshll.u32 %v3498_v26, 16 }
  0xef   : > { %v783_v36 = vpop.f32.mrf.mxu0  ;;  %v887_v46 = vmax.f32 %v781_v33, 0.0 }
  0xf0   : > { %v890_v40 = vmax.f32 %v792_v34, 0.0  ;;  %v784_v41 = vadd.f32 %v3461_v30, %v783_v36  ;;  %v1008_v44 = vrot.slane %v1006_v38, 7  ;;  %v3514_v45 = vor.u32 %v1016_v35, %v1015_v37 }
  0xf1   : > { %v3040_v43 = vpop.f32.mrf.mxu0 }
  0xf2   : > { %v966_v47 = vpack.c.bf16 %v890_v40, %v889_v39  ;;  %v888_v48 = vmax.f32 %v784_v41, 0.0  ;;  %v3518_v51 = vor.u32 %v1009_v42, %v1008_v44  ;;  %v805_v54 = vadd.f32 %v3040_v43, %v3461_v30  ;;  %v3542_v44 = vld [vmem:[%s4087_s4 + $0x8] sm:$0x3f]  }
  0xf3   : > { %v796_v49 = vpop.f32.mrf.mxu0  ;;  %3198 = vmatprep.subr.msk.bf16.mxu1 %vm1458_vm4, %v3542_v44 }
  0xf4   : > { %v1030_v52 = vshll.u32 %v966_v47, 16  ;;  %v965_v53 = vpack.c.bf16 %v888_v48, %v887_v46  ;;  %1249 = vrot.lane.b32.xlu0 %v966_v47, %s3308_s26  ;;  %v1027_v56 = vshrl.u32 %v966_v47, 16  ;;  %v797_v59 = vadd.f32 %v3461_v30, %v796_v49 }
  0xf5   : > { %v3041_v55 = vpop.f32.mrf.mxu0  ;;  %v893_v3 = vmax.f32 %v805_v54, 0.0 }
  0xf6   : > { %v1023_v57 = vshll.u32 %v965_v53, 16  ;;  %v808_v60 = vadd.f32 %v3041_v55, %v3461_v30  ;;  %v1156_v62 = vrot.slane %v1030_v52, 1  ;;  %v1029_v0 = vrot.slane %v1027_v56, 7 }
  0xf7   : > { %v799_v63 = vpop.f32.mrf.mxu0  ;;  %v1020_v2 = vshrl.u32 %v965_v53, 16  ;;  %v891_v14 = vmax.f32 %v797_v59, 0.0 }
  0xf8   : > { %v894_v5 = vmax.f32 %v808_v60, 0.0  ;;  %v800_v6 = vadd.f32 %v3461_v30, %v799_v63  ;;  %1247 = vrot.lane.b32.xlu0 %v965_v53, %s3308_s26  ;;  %v1157_v9 = vor.u32 %v1156_v62, %v1027_v56  ;;  %v1154_v12 = vrot.slane %v1023_v57, 1 }
  0xf9   : > { %v3044_v10 = vpop.f32.mrf.mxu0  ;;  %v1022_v11 = vrot.slane %v1020_v2, 7  ;;  %v3526_v13 = vor.u32 %v1030_v52, %v1029_v0 }
  0xfa   : > { %v968_v15 = vpack.c.bf16 %v894_v5, %v893_v3  ;;  %v892_v16 = vmax.f32 %v800_v6, 0.0  ;;  %v1206_v18 = vsel %vm3434_vm3, %v1157_v9, 0  ;;  %v821_v7 = vadd.f32 %v3044_v10, %v3461_v30 }
  0xfb   : > { %v812_v21 = vpop.f32.mrf.mxu0  ;;  %1303 = vrot.lane.b32.xlu1 %v1206_v18, %s3310_s27  ;;  %v3534_v29 = vor.u32 %v1023_v57, %v1022_v11  ;;  %v1155_v37 = vor.u32 %v1154_v12, %v1020_v2 }
  0xfc   : > { %v967_v31 = vpack.c.bf16 %v892_v16, %v891_v14  ;;  %1293 = vrot.lane.b32.xlu0 %v1201_v24, %s3310_s27  ;;  %v1044_v33 = vshll.u32 %v968_v15, 16  ;;  %v813_v34 = vadd.f32 %v3461_v30, %v812_v21  ;;  %v1041_v39 = vshrl.u32 %v968_v15, 16 }
  0xfd   : > { %v3045_v36 = vpop.f32.mrf.mxu0  ;;  %v897_v46 = vmax.f32 %v821_v7, 0.0  ;;  %v1205_v56 = vsel %vm3434_vm3, %v1155_v37, 0  ;;  %v1148_v14 = vrot.slane %v1002_v8, 1 }
  0xfe   : > { %v1037_v40 = vshll.u32 %v967_v31, 16  ;;  %v824_v41 = vadd.f32 %v3045_v36, %v3461_v30  ;;  %v1034_v43 = vshrl.u32 %v967_v31, 16  ;;  %v1043_v48 = vrot.slane %v1041_v39, 7 }
  0xff   : > { %v815_v47 = vpop.f32.mrf.mxu0  ;;  %1253 = vrot.lane.b32.xlu1 %v968_v15, %s3308_s26  ;;  %v895_v54 = vmax.f32 %v813_v34, 0.0  ;;  %v1160_v57 = vrot.slane %v1044_v33, 1 }
 0x100   : > { %v898_v49 = vmax.f32 %v824_v41, 0.0  ;;  %v816_v50 = vadd.f32 %v3461_v30, %v815_v47  ;;  %1251 = vrot.lane.b32.xlu0 %v967_v31, %s3308_s26  ;;  %v1036_v52 = vrot.slane %v1034_v43, 7  ;;  %v1158_v53 = vrot.slane %v1037_v40, 1 }
 0x101   : > { %v3048_v55 = vpop.f32.mrf.mxu0  ;;  %v3551_v59 = vor.u32 %v1044_v33, %v1043_v48  ;;  %v1161_v11 = vor.u32 %v1160_v57, %v1041_v39 }
 0x102   : > { %v3553_v60 = vpack.c.bf16 %v898_v49, %v897_v46  ;;  %v896_v62 = vmax.f32 %v816_v50, 0.0  ;;  %v837_v63 = vadd.f32 %v3048_v55, %v3461_v30  ;;  %v1159_v0 = vor.u32 %v1158_v53, %v1034_v43 }
 0x103   : > { %v828_v1 = vpop.f32.mrf.mxu0  ;;  %1301 = vrot.lane.b32.xlu1 %v1205_v56, %s3310_s27  ;;  %v3557_v2 = vor.u32 %v1037_v40, %v1036_v52  ;;  %v1149_v40 = vor.u32 %v1148_v14, %v999_v4  ;;  %v1208_v49 = vsel %vm3434_vm3, %v1161_v11, 0 }
 0x104   : > { %v1058_v3 = vshll.u32 %v3553_v60, 16  ;;  %v969_v5 = vpack.c.bf16 %v896_v62, %v895_v54  ;;  %v829_v6 = vadd.f32 %v3461_v30, %v828_v1  ;;  %v1207_v10 = vsel %vm3434_vm3, %v1159_v0, 0 }
 0x105   : > { %v3049_v9 = vpop.f32.mrf.mxu0  ;;  %v1055_v12 = vshrl.u32 %v3553_v60, 16  ;;  %v901_v16 = vmax.f32 %v837_v63, 0.0  ;;  %1305 = vrot.lane.b32.xlu0 %v1207_v10, %s3310_s27  ;;  %v1202_v0 = vsel %vm3434_vm3, %v1149_v40, 0 }
 0x106   : > { %v1051_v15 = vshll.u32 %v969_v5, 16  ;;  %v840_v18 = vadd.f32 %v3049_v9, %v3461_v30  ;;  %v1164_v7 = vrot.slane %v1058_v3, 1  ;;  %v1048_v31 = vshrl.u32 %v969_v5, 16 }
 0x107   : > { %v831_v21 = vpop.f32.mrf.mxu0  ;;  %1241 = vrot.lane.b32.xlu1 %v3476_v61, %s3308_s26  ;;  %v1057_v24 = vrot.slane %v1055_v12, 7  ;;  %v899_v33 = vmax.f32 %v829_v6, 0.0 }
 0x108   : > { %v902_v34 = vmax.f32 %v840_v18, 0.0  ;;  %v832_v36 = vadd.f32 %v3461_v30, %v831_v21  ;;  %v1162_v37 = vrot.slane %v1051_v15, 1  ;;  %v1165_v8 = vor.u32 %v1164_v7, %v1055_v12  ;;  %v3598_v7 = vld [vmem:[%s4087_s4 + $0x10] sm:$0x3f]  }
 0x109   : > { %v3052_v39 = vpop.f32.mrf.mxu0  ;;  %v1050_v41 = vrot.slane %v1048_v31, 7  ;;  %v3573_v43 = vor.u32 %v1058_v3, %v1057_v24  ;;  %1255 = vrot.lane.b32.xlu0 %v969_v5, %s3308_s26  ;;  %3199 = vmatprep.subr.msk.bf16.mxu0 %vm1458_vm4, %v3598_v7  ;;  %v1878_v22 = vsel %vm1458_vm4, %v3598_v7, 0 }
 0x10a   : > { %v972_v46 = vpack.c.bf16 %v902_v34, %v901_v16  ;;  %v900_v47 = vmax.f32 %v832_v36, 0.0  ;;  %v853_v48 = vadd.f32 %v3052_v39, %v3461_v30  ;;  %v1163_v4 = vor.u32 %v1162_v37, %v1048_v31 }
 0x10b   : > { %1307 = vrot.lane.b32.xlu1 %v1208_v49, %s3310_s27  ;;  %v844_v50 = vpop.f32.mrf.mxu0  ;;  %v3580_v52 = vor.u32 %v1051_v15, %v1050_v41  ;;  %v1210_v55 = vsel %vm3434_vm3, %v1165_v8, 0 }
 0x10c   : > { %v971_v53 = vpack.c.bf16 %v900_v47, %v899_v33  ;;  %v845_v61 = vadd.f32 %v3461_v30, %v844_v50  ;;  %v1072_v54 = vshll.u32 %v972_v46, 16  ;;  %v1069_v57 = vshrl.u32 %v972_v46, 16 }
 0x10d   : > { %v3053_v56 = vpop.f32.mrf.mxu0  ;;  %v905_v62 = vmax.f32 %v853_v48, 0.0  ;;  %1311 = vrot.lane.b32.xlu0 %v1210_v55, %s3310_s27  ;;  %v1209_v11 = vsel %vm3434_vm3, %v1163_v4, 0 }
 0x10e   : > { %v856_v63 = vadd.f32 %v3053_v56, %v3461_v30  ;;  %v1071_v3 = vrot.slane %v1069_v57, 7  ;;  %v1062_v5 = vshrl.u32 %v971_v53, 16  ;;  %v903_v6 = vmax.f32 %v845_v61, 0.0 }
 0x10f   : > { %1295 = vrot.lane.b32.xlu1 %v1202_v0, %s3310_s27  ;;  %v847_v1 = vpop.f32.mrf.mxu0  ;;  %v1065_v12 = vshll.u32 %v971_v53, 16  ;;  %v1168_v14 = vrot.slane %v1072_v54, 1 }
 0x110   : > { %v906_v9 = vmax.f32 %v856_v63, 0.0  ;;  %v848_v10 = vadd.f32 %v3461_v30, %v847_v1  ;;  %v1064_v15 = vrot.slane %v1062_v5, 7  ;;  %v3593_v18 = vor.u32 %v1072_v54, %v1071_v3 }
 0x111   : > { %v3056_v16 = vpop.f32.mrf.mxu0  ;;  %1309 = vrot.lane.b32.xlu0 %v1209_v11, %s3310_s27  ;;  %v1169_v37 = vor.u32 %v1168_v14, %v1069_v57  ;;  %v1166_v39 = vrot.slane %v1065_v12, 1  ;;  %v1152_v1 = vrot.slane %v1016_v35, 1 }
 0x112   : > { %v974_v21 = vpack.c.bf16 %v906_v9, %v905_v62  ;;  %v904_v24 = vmax.f32 %v848_v10, 0.0  ;;  %v3603_v33 = vor.u32 %v1065_v12, %v1064_v15  ;;  %v1150_v15 = vrot.slane %v1009_v42, 1 }
 0x113   : > { %1257 = vrot.lane.b32.xlu1 %v3553_v60, %s3308_s26  ;;  %v860_v31 = vpop.f32.mrf.mxu0  ;;  %v1212_v54 = vsel %vm3434_vm3, %v1169_v37, 0  ;;  %v1167_v55 = vor.u32 %v1166_v39, %v1062_v5 }
 0x114   : > { %v973_v34 = vpack.c.bf16 %v904_v24, %v903_v6  ;;  %v861_v36 = vadd.f32 %v3461_v30, %v860_v31  ;;  %v1083_v40 = vshrl.u32 %v974_v21, 16  ;;  %v1086_v47 = vshll.u32 %v974_v21, 16 }
 0x115   : > { %v3057_v8 = vpop.f32.mrf.mxu0  ;;  %1259 = vrot.lane.b32.xlu0 %v971_v53, %s3308_s26  ;;  %v1211_v63 = vsel %vm3434_vm3, %v1167_v55, 0 }
 0x116   : > { %v1076_v41 = vshrl.u32 %v973_v34, 16  ;;  %v1085_v48 = vrot.slane %v1083_v40, 7  ;;  %v1079_v49 = vshll.u32 %v973_v34, 16  ;;  %v907_v50 = vmax.f32 %v861_v36, 0.0 }
 0x117   : > { %1243 = vrot.lane.b32.xlu1 %v3498_v26, %s3308_s26  ;;  %v863_v60 = vpop.f32.mrf.mxu0  ;;  %v1172_v0 = vrot.slane %v1086_v47, 1  ;;  %v1125_v26 = vsel %vm3450_vm7, 0, %v3474_v58  ;;  %v1126_v58 = vsel %vm3450_vm7, 0, %v3496_v25  ;;  %v1131_v25 = vsel %vm3450_vm7, 0, %v3526_v13 }
 0x118   : > { %v864_v61 = vadd.f32 %v3461_v30, %v863_v60  ;;  %v1078_v4 = vrot.slane %v1076_v41, 7  ;;  %v3614_v56 = vor.u32 %v1086_v47, %v1085_v48  ;;  %v1170_v10 = vrot.slane %v1079_v49, 1 }
 0x119   : > { %1315 = vrot.lane.b32.xlu0 %v1212_v54, %s3310_s27  ;;  %v1173_v9 = vor.u32 %v1172_v0, %v1083_v40  ;;  %v1130_v47 = vsel %vm3450_vm7, 0, %v3534_v29  ;;  %v1132_v29 = vsel %vm3450_vm7, 0, %v3557_v2  ;;  %v1133_v2 = vsel %vm3450_vm7, 0, %v3551_v59 }
 0x11a   : > { %v908_v53 = vmax.f32 %v864_v61, 0.0  ;;  %v3617_v57 = vor.u32 %v1079_v49, %v1078_v4  ;;  %v1171_v14 = vor.u32 %v1170_v10, %v1076_v41  ;;  %v1672_v61 = vsel %vm1458_vm4, %v3542_v44, 0 }
 0x11b   : > { %1261 = vrot.lane.b32.xlu1 %v972_v46, %s3308_s26  ;;  %v1153_v46 = vor.u32 %v1152_v1, %v1013_v32  ;;  %v1214_v35 = vsel %vm3434_vm3, %v1173_v9, 0 }
 0x11c   : > { %v975_v62 = vpack.c.bf16 %v908_v53, %v907_v50  ;;  %v1213_v32 = vsel %vm3434_vm3, %v1171_v14, 0 }
 0x11d   : > { %1313 = vrot.lane.b32.xlu0 %v1211_v63, %s3310_s27  ;;  %v1204_v16 = vsel %vm3434_vm3, %v1153_v46, 0  ;;  %v1135_v46 = vsel %vm3450_vm7, 0, %v3573_v43  ;;  %v1137_v43 = vsel %vm3450_vm7, 0, %v3593_v18 }
 0x11e   : > { %v1093_v30 = vshll.u32 %v975_v62, 16  ;;  %v1090_v3 = vshrl.u32 %v975_v62, 16 }
 0x11f   : > { %1245 = vrot.lane.b32.xlu1 %v3494_v20, %s3308_s26 }
 0x120   : > { %v1092_v5 = vrot.slane %v1090_v3, 7  ;;  %v1174_v6 = vrot.slane %v1093_v30, 1 }
 0x121   : > { %1263 = vrot.lane.b32.xlu0 %v973_v34, %s3308_s26 }
 0x122   : > { %v3630_v11 = vor.u32 %v1093_v30, %v1092_v5  ;;  %v1175_v12 = vor.u32 %v1174_v6, %v1090_v3  ;;  %v1127_v30 = vsel %vm3450_vm7, 0, %v3492_v17  ;;  %v1134_v6 = vsel %vm3450_vm7, 0, %v3580_v52 }
 0x123   : > { %1265 = vrot.lane.b32.xlu1 %v974_v21, %s3308_s26  ;;  %v1151_v21 = vor.u32 %v1150_v15, %v1006_v38 }
 0x124   : > { %v1215_v20 = vsel %vm3434_vm3, %v1175_v12, 0 }
 0x125   : > { %1319 = vrot.lane.b32.xlu0 %v1214_v35, %s3310_s27  ;;  %v1203_v42 = vsel %vm3434_vm3, %v1151_v21, 0 }
 0x127   : > { %1299 = vrot.lane.b32.xlu1 %v1204_v16, %s3310_s27 }
 0x129   : > { %1317 = vrot.lane.b32.xlu0 %v1213_v32, %s3310_s27  ;;  %v1136_v32 = vsel %vm3450_vm7, 0, %v3603_v33  ;;  %v1139_v33 = vsel %vm3450_vm7, 0, %v3614_v56  ;;  %v1128_v56 = vsel %vm3450_vm7, 0, %v3518_v51 }
 0x12b   : > { %1321 = vrot.lane.b32.xlu1 %v1215_v20, %s3310_s27 }
 0x12d   : > { %1297 = vrot.lane.b32.xlu0 %v1203_v42, %s3310_s27 }
 0x12f   : > { %1323 = vrot.lane.b32.xlu1 %v3440_v23, %s3310_s27 }
 0x131   : > { %1267 = vrot.lane.b32.xlu0 %v975_v62, %s3308_s26 }
 0x135   : > { %1269 = vrot.lane.b32.xlu0 %v3307_v19, %s3308_s26 }
 0x14e   : > { %v1238_v24 = vpop.permute.xlu1 %1237 }
 0x14f   : > { %v1331_v38 = vsel %vm1325_vm8, %v1125_v26, %v1238_v24 }
 0x155   : > { %v1292_v31 = vpop.permute.xlu1 %1291 }
 0x156   : > { %v3664_v34 = vsel %vm1380_vm9, %v1331_v38, %v1292_v31 }
 0x157   : > { %3061 = vmatmul.mubr.msk.bf16.vlgmr.msra.gmra.mxu0 %vm1425_vm10, %v3664_v34 }
 0x158   : > { %3127 = vmatpush3.bf16.msra.mxu0 %v1878_v22 }
 0x159   : > { %v1240_v19 = vpop.permute.xlu1 %1239 }
 0x15a   : > { %v1334_v39 = vsel %vm1325_vm8, %v1126_v58, %v1240_v19  ;;  %v1138_v19 = vsel %vm3450_vm7, 0, %v3617_v57 }
 0x166   : > { %v1250_v23 = vpop.permute.xlu0 %1249 }
 0x167   : > { %v1349_v49 = vsel %vm1325_vm8, %v1131_v25, %v1250_v23 }
 0x16a   : > { %v1248_v36 = vpop.permute.xlu0 %1247 }
 0x16b   : > { %v1346_v60 = vsel %vm1325_vm8, %v1130_v47, %v1248_v36  ;;  %v1129_v47 = vsel %vm3450_vm7, 0, %v3514_v45 }
 0x16d   : > { %v1304_v37 = vpop.permute.xlu1 %1303 }
 0x16e   : > { %v1294_v8 = vpop.permute.xlu0 %1293  ;;  %v3691_v4 = vsel %vm1380_vm9, %v1349_v49, %v1304_v37 }
 0x16f   : > { %v3673_v7 = vsel %vm1380_vm9, %v1334_v39, %v1294_v8 }
 0x170   : > { %3064 = vmatprep.mubr.msk.bf16.mxu0 %vm1425_vm10, %v3673_v7 }
 0x171   : > { %v1254_v40 = vpop.permute.xlu1 %1253 }
 0x172   : > { %v1252_v41 = vpop.permute.xlu0 %1251  ;;  %v1355_v62 = vsel %vm1325_vm8, %v1133_v2, %v1254_v40  ;;  %v2121_v40 = vld [vmem:[%s4088_s5] sm:$0x3] }
 0x173   : > { %v1352_v13 = vsel %vm1325_vm8, %v1132_v29, %v1252_v41  ;;  %v2211_v45 = vsel %vm2209_vm11, %v2121_v40, 0 }
 0x175   : > { %v1302_v48 = vpop.permute.xlu1 %1301 }
 0x176   : > { %v3686_v50 = vsel %vm1380_vm9, %v1346_v60, %v1302_v48 }
 0x177   : > { %3072 = vmatprep.mubr.msk.bf16.mxu1 %vm1425_vm10, %v3686_v50  ;;  %v1306_v54 = vpop.permute.xlu0 %1305 }
 0x178   : > { %3073 = vmatmul.mubr.msk.bf16.vlgmr.msra.gmra.mxu1 %vm1425_vm10, %v3691_v4  ;;  %v3702_v55 = vsel %vm1380_vm9, %v1352_v13, %v1306_v54 }
 0x179   : > { %v1242_v44 = vpop.permute.xlu1 %1241  ;;  %3093 = vmatpush3.bf16.msra.mxu1 %v1672_v61  ;;  %3076 = vmatprep.mubr.msk.bf16.mxu1 %vm1425_vm10, %v3702_v55 }
 0x17a   : > { %v1337_v3 = vsel %vm1325_vm8, %v1127_v30, %v1242_v44  ;;  %3200 = vmatprep.subr.msk.bf16.mxu1 %vm2209_vm11, %v2121_v40 }
 0x17b   : > { %v1256_v53 = vpop.permute.xlu0 %1255 }
 0x17c   : > { %v1358_v9 = vsel %vm1325_vm8, %v1134_v6, %v1256_v53 }
 0x17d   : > { %v1308_v63 = vpop.permute.xlu1 %1307 }
 0x17e   : > { %v3711_v0 = vsel %vm1380_vm9, %v1355_v62, %v1308_v63 }
 0x17f   : > { %v1312_v1 = vpop.permute.xlu0 %1311 }
 0x180   : > { %3077 = vmatmul.mubr.msk.bf16.gmra.mxu1 %vm1425_vm10, %v3711_v0 }
 0x181   : > { %v1296_v5 = vpop.permute.xlu1 %1295 }
 0x182   : > { %v1388_v59 = vsel %vm1380_vm9, %v1337_v3, %v1296_v5 }
 0x183   : > { %3065 = vmatmul.mubr.msk.bf16.gmra.mxu0 %vm1425_vm10, %v1388_v59  ;;  %v1310_v10 = vpop.permute.xlu0 %1309 }
 0x184   : > { %v3726_v17 = vsel %vm1380_vm9, %v1358_v9, %v1310_v10 }
 0x185   : > { %v1258_v12 = vpop.permute.xlu1 %1257  ;;  %3080 = vmatprep.mubr.msk.bf16.mxu1 %vm1425_vm10, %v3726_v17 }
 0x186   : > { %v1361_v35 = vsel %vm1325_vm8, %v1135_v46, %v1258_v12 }
 0x187   : > { %v3735_v52 = vsel %vm1380_vm9, %v1361_v35, %v1312_v1  ;;  %v1260_v14 = vpop.permute.xlu0 %1259 }
 0x188   : > { %3081 = vmatmul.mubr.msk.bf16.gmra.mxu1 %vm1425_vm10, %v3735_v52  ;;  %v1364_v42 = vsel %vm1325_vm8, %v1136_v32, %v1260_v14 }
 0x189   : > { %v1244_v15 = vpop.permute.xlu1 %1243 }
 0x18a   : > { %v1340_v41 = vsel %vm1325_vm8, %v1128_v56, %v1244_v15 }
 0x18b   : > { %v1316_v16 = vpop.permute.xlu0 %1315 }
 0x18d   : > { %v1262_v20 = vpop.permute.xlu1 %1261 }
 0x18e   : > { %v1367_v21 = vsel %vm1325_vm8, %v1137_v43, %v1262_v20 }
 0x18f   : > { %v1314_v24 = vpop.permute.xlu0 %1313  ;;  %v1408_v31 = vsel %vm1380_vm9, %v1367_v21, %v1316_v16 }
 0x190   : > { %v1406_v26 = vsel %vm1380_vm9, %v1364_v42, %v1314_v24 }
 0x191   : > { %v1246_v38 = vpop.permute.xlu1 %1245  ;;  %3084 = vmatprep.mubr.msk.bf16.mxu1 %vm1425_vm10, %v1406_v26 }
 0x192   : > { %3085 = vmatmul.mubr.msk.bf16.gmra.mxu1 %vm1425_vm10, %v1408_v31  ;;  %v1343_v60 = vsel %vm1325_vm8, %v1129_v47, %v1246_v38 }
 0x193   : > { %v1264_v22 = vpop.permute.xlu0 %1263 }
 0x194   : > { %v1370_v58 = vsel %vm1325_vm8, %v1138_v19, %v1264_v22 }
 0x195   : > { %v1266_v18 = vpop.permute.xlu1 %1265 }
 0x196   : > { %v1373_v36 = vsel %vm1325_vm8, %v1139_v33, %v1266_v18 }
 0x197   : > { %v1320_v23 = vpop.permute.xlu0 %1319 }
 0x198   : > { %v1412_v8 = vsel %vm1380_vm9, %v1373_v36, %v1320_v23 }
 0x199   : > { %v1300_v57 = vpop.permute.xlu1 %1299 }
 0x19a   : > { %v1392_v51 = vsel %vm1380_vm9, %v1343_v60, %v1300_v57 }
 0x19b   : > { %v1318_v37 = vpop.permute.xlu0 %1317 }
 0x19c   : > { %v1410_v39 = vsel %vm1380_vm9, %v1370_v58, %v1318_v37 }
 0x19d   : > { %3088 = vmatprep.mubr.msk.bf16.mxu1 %vm1425_vm10, %v1410_v39 }
 0x19e   : > { %3089 = vmatmul.mubr.msk.bf16.gmra.mxu1 %vm1425_vm10, %v1412_v8 }
 0x19f   : > { %3094 = vmatprep.mubr.msk.bf16.mxu1 %vm1425_vm10, %v3664_v34  ;;  %v1298_v25 = vpop.permute.xlu0 %1297 }
 0x1a0   : > { %v1390_v48 = vsel %vm1380_vm9, %v1340_v41, %v1298_v25 }
 0x1a1   : > { %3068 = vmatprep.mubr.msk.bf16.mxu0 %vm1425_vm10, %v1390_v48 }
 0x1a2   : > { %3069 = vmatmul.mubr.msk.bf16.gmra.mxu0 %vm1425_vm10, %v1392_v51 }
 0x1a3   : > { %3128 = vmatprep.mubr.msk.bf16.mxu0 %vm1425_vm10, %v3673_v7  ;;  %v1268_v34 = vpop.permute.xlu0 %1267 }
 0x1a6   : > { %3095 = vmatmul.mubr.msk.bf16.vlgmr.msra.gmra.mxu1 %vm1425_vm10, %v3673_v7  ;;  %v1140_v7 = vsel %vm3450_vm7, 0, %v3630_v11 }
 0x1a7   : > { %3098 = vmatprep.mubr.msk.bf16.mxu1 %vm1425_vm10, %v1388_v59  ;;  %3161 = vmatpush3.bf16.msra.mxu1 %v2211_v45  ;;  %v1376_v49 = vsel %vm1325_vm8, %v1140_v7, %v1268_v34  ;;  %v1270_v61 = vpop.permute.xlu0 %1269 }
 0x1a8   : > { %v1379_v29 = vsel %vm1325_vm8, %v3456_v28, %v1270_v61 }
 0x1aa   : > { %3129 = vmatmul.mubr.msk.bf16.vlgmr.msra.gmra.mxu0 %vm1425_vm10, %v1388_v59 }
 0x1ab   : > { %3132 = vmatprep.mubr.msk.bf16.mxu0 %vm1425_vm10, %v1390_v48 }
 0x1ae   : > { %3099 = vmatmul.mubr.msk.bf16.gmra.mxu1 %vm1425_vm10, %v1390_v48 }
 0x1af   : > { %3102 = vmatprep.mubr.msk.bf16.mxu1 %vm1425_vm10, %v1392_v51 }
 0x1b2   : > { %3133 = vmatmul.mubr.msk.bf16.gmra.mxu0 %vm1425_vm10, %v1392_v51 }
 0x1b3   : > { %3136 = vmatprep.mubr.msk.bf16.mxu0 %vm1425_vm10, %v3686_v50 }
 0x1b6   : > { %3103 = vmatmul.mubr.msk.bf16.gmra.mxu1 %vm1425_vm10, %v3686_v50  ;;  %v1322_v50 = vpop.permute.xlu1 %1321 }
 0x1b7   : > { %3106 = vmatprep.mubr.msk.bf16.mxu1 %vm1425_vm10, %v3691_v4 }
 0x1ba   : > { %3137 = vmatmul.mubr.msk.bf16.gmra.mxu0 %vm1425_vm10, %v3691_v4  ;;  %v1414_v4 = vsel %vm1380_vm9, %v1376_v49, %v1322_v50  ;;  %v1324_v13 = vpop.permute.xlu1 %1323 }
 0x1bb   : > { %3140 = vmatprep.mubr.msk.bf16.mxu0 %vm1425_vm10, %v3702_v55  ;;  %v1416_v27 = vsel %vm1380_vm9, %v1379_v29, %v1324_v13 }
 0x1be   : > { %3107 = vmatmul.mubr.msk.bf16.gmra.mxu1 %vm1425_vm10, %v3702_v55 }
 0x1bf   : > { %3110 = vmatprep.mubr.msk.bf16.mxu1 %vm1425_vm10, %v3711_v0 }
 0x1c2   : > { %3141 = vmatmul.mubr.msk.bf16.gmra.mxu0 %vm1425_vm10, %v3711_v0 }
 0x1c3   : > { %3144 = vmatprep.mubr.msk.bf16.mxu0 %vm1425_vm10, %v3726_v17 }
 0x1c6   : > { %3111 = vmatmul.mubr.msk.bf16.gmra.mxu1 %vm1425_vm10, %v3726_v17 }
 0x1c7   : > { %3114 = vmatprep.mubr.msk.bf16.mxu1 %vm1425_vm10, %v3735_v52 }
 0x1ca   : > { %3145 = vmatmul.mubr.msk.bf16.gmra.mxu0 %vm1425_vm10, %v3735_v52 }
 0x1cb   : > { %3148 = vmatprep.mubr.msk.bf16.mxu0 %vm1425_vm10, %v1406_v26 }
 0x1ce   : > { %3115 = vmatmul.mubr.msk.bf16.gmra.mxu1 %vm1425_vm10, %v1406_v26 }
 0x1cf   : > { %3118 = vmatprep.mubr.msk.bf16.mxu1 %vm1425_vm10, %v1408_v31 }
 0x1d2   : > { %3149 = vmatmul.mubr.msk.bf16.gmra.mxu0 %vm1425_vm10, %v1408_v31  ;;  %v3880_v31 = vld [vmem:[%s4090_s7] ss:$0 sm:$0xff] }
 0x1d3   : > { %3152 = vmatprep.mubr.msk.bf16.mxu0 %vm1425_vm10, %v1410_v39 }
 0x1d6   : > { %3119 = vmatmul.mubr.msk.bf16.gmra.mxu1 %vm1425_vm10, %v1410_v39 }
 0x1d7   : > { %3122 = vmatprep.mubr.msk.bf16.mxu1 %vm1425_vm10, %v1412_v8 }
 0x1da   : > { %3153 = vmatmul.mubr.msk.bf16.gmra.mxu0 %vm1425_vm10, %v1412_v8 }
 0x1db   : > { %3156 = vmatprep.mubr.msk.bf16.mxu0 %vm1425_vm10, %v1414_v4 }
 0x1de   : > { %3123 = vmatmul.mubr.msk.bf16.gmra.mxu1 %vm1425_vm10, %v1414_v4 }
 0x1e2   : > { %3157 = vmatmul.mubr.msk.bf16.gmra.mxu0 %vm1425_vm10, %v1416_v27 }
 0x217   : > { %v3062_v63 = vpop.f32.mrf.mxu0 }
 0x218   : > { %v1631_v19 = vadd.f32 %v3062_v63, %v3880_v31 }
 0x219   : > { %v1496_v1 = vpop.f32.mrf.mxu0 }
 0x21a   : > { %v1629_v23 = vadd.f32 %v3880_v31, %v1496_v1 }
 0x21b   : > { %v3063_v5 = vpop.f32.mrf.mxu0 }
 0x21c   : > { %v1632_v33 = vadd.f32 %v3063_v5, %v3880_v31 }
 0x21d   : > { %v1499_v6 = vpop.f32.mrf.mxu0 }
 0x21e   : > { %v1630_v37 = vadd.f32 %v3880_v31, %v1499_v6 }
 0x238   : > { %v3835_v11 = vpop.f32.mrf.mxu1 }
 0x23a   : > { %v3837_v54 = vpop.f32.mrf.mxu1 }
 0x23c   : > { %v3839_v55 = vpop.f32.mrf.mxu1 }
 0x23e   : > { %v3841_v44 = vpop.f32.mrf.mxu1 }
 0x240   : > { %v3843_v2 = vpop.f32.mrf.mxu1 }
 0x242   : > { %v3845_v53 = vpop.f32.mrf.mxu1 }
 0x243   : > { %v3066_v10 = vpop.f32.mrf.mxu0 }
 0x244   : > { %v3847_v28 = vpop.f32.mrf.mxu1  ;;  %v1635_v13 = vadd.f32 %v3066_v10, %v3880_v31 }
 0x245   : > { %v1512_v46 = vpop.f32.mrf.mxu0 }
 0x246   : > { %v3849_v62 = vpop.f32.mrf.mxu1  ;;  %v1633_v50 = vadd.f32 %v3880_v31, %v1512_v46 }
 0x247   : > { %v3067_v35 = vpop.f32.mrf.mxu0 }
 0x248   : > { %v3851_v0 = vpop.f32.mrf.mxu1  ;;  %v1636_v61 = vadd.f32 %v3067_v35, %v3880_v31 }
 0x249   : > { %v1515_v15 = vpop.f32.mrf.mxu0 }
 0x24a   : > { %v3853_v30 = vpop.f32.mrf.mxu1  ;;  %v1634_v5 = vadd.f32 %v3880_v31, %v1515_v15 }
 0x24c   : > { %v3855_v3 = vpop.f32.mrf.mxu1 }
 0x24e   : > { %v3857_v59 = vpop.f32.mrf.mxu1 }
 0x252   : > { %v3859_v9 = vpop.f32.mrf.mxu1 }
 0x254   : > { %v3861_v17 = vpop.f32.mrf.mxu1 }
 0x256   : > { %v3863_v12 = vpop.f32.mrf.mxu1 }
 0x258   : > { %v3865_v52 = vpop.f32.mrf.mxu1 }
 0x25e   : > { %v3867_v14 = vpop.f32.mrf.mxu1 }
 0x260   : > { %v3869_v16 = vpop.f32.mrf.mxu1 }
 0x262   : > { %v3871_v20 = vpop.f32.mrf.mxu0  ;;  %v3873_v43 = vpop.f32.mrf.mxu1 }
 0x264   : > { %v1528_v32 = vpop.f32.mrf.mxu0  ;;  %v3875_v21 = vpop.f32.mrf.mxu1 }
 0x266   : > { %v3071_v42 = vpop.f32.mrf.mxu0  ;;  %v3096_v24 = vpop.f32.mrf.mxu1 }
 0x267   : > { %v1837_v40 = vadd.f32 %v3096_v24, %v1631_v19 }
 0x268   : > { %v1531_v26 = vpop.f32.mrf.mxu0  ;;  %v1708_v38 = vpop.f32.mrf.mxu1 }
 0x269   : > { %v1835_v39 = vadd.f32 %v1708_v38, %v1629_v23 }
 0x26a   : > { %v3097_v22 = vpop.f32.mrf.mxu1  ;;  %v3130_v18 = vpop.f32.mrf.mxu0 }
 0x26b   : > { %v1838_v8 = vadd.f32 %v3097_v22, %v1632_v33  ;;  %v2043_v60 = vadd.f32 %v3130_v18, %v1837_v40  ;;  %v1637_v40 = vadd.f32 %v3880_v31, %v1528_v32 }
 0x26c   : > { %v1711_v36 = vpop.f32.mrf.mxu1  ;;  %v1914_v58 = vpop.f32.mrf.mxu0 }
 0x26d   : > { %v1836_v41 = vadd.f32 %v1711_v36, %v1630_v37  ;;  %v2041_v47 = vadd.f32 %v1914_v58, %v1835_v39  ;;  %v2075_v27 = vmax.f32 %v2043_v60, 0.0 }
 0x26e   : > { %v3100_v56 = vpop.f32.mrf.mxu1  ;;  %v3131_v57 = vpop.f32.mrf.mxu0 }
 0x26f   : > { %v2044_v25 = vadd.f32 %v3131_v57, %v1838_v8  ;;  %v2073_v4 = vmax.f32 %v2041_v47, 0.0  ;;  %v1841_v22 = vadd.f32 %v3100_v56, %v1635_v13  ;;  %v1640_v56 = vadd.f32 %v3071_v42, %v3880_v31 }
 0x270   : > { %v1724_v48 = vpop.f32.mrf.mxu1  ;;  %v1917_v51 = vpop.f32.mrf.mxu0  ;;  %v1639_v47 = vadd.f32 %v3871_v20, %v3880_v31 }
 0x271   : > { %v2042_v45 = vadd.f32 %v1917_v51, %v1836_v41  ;;  %v2076_v34 = vmax.f32 %v2044_v25, 0.0  ;;  %v1839_v6 = vadd.f32 %v1724_v48, %v1633_v50  ;;  %v1638_v51 = vadd.f32 %v3880_v31, %v1531_v26 }
 0x272   : > { %v3101_v7 = vpop.f32.mrf.mxu1  ;;  %v3134_v49 = vpop.f32.mrf.mxu0  ;;  %v1643_v26 = vadd.f32 %v3835_v11, %v3880_v31 }
 0x273   : > { %v2074_v29 = vmax.f32 %v2042_v45, 0.0  ;;  %v1842_v38 = vadd.f32 %v3101_v7, %v1636_v61  ;;  %v2106_v18 = vpack.c.bf16 %v2076_v34, %v2075_v27  ;;  %v2047_v35 = vadd.f32 %v3134_v49, %v1841_v22 }
 0x274   : > { %v1727_v63 = vpop.f32.mrf.mxu1  ;;  %v1930_v1 = vpop.f32.mrf.mxu0 }
 0x275   : > { %v2105_v24 = vpack.c.bf16 %v2074_v29, %v2073_v4  ;;  %v1840_v19 = vadd.f32 %v1727_v63, %v1634_v5  ;;  %v2045_v46 = vadd.f32 %v1930_v1, %v1839_v6  ;;  %v2079_v25 = vmax.f32 %v2047_v35, 0.0 }
 0x276   : > { %v3104_v23 = vpop.f32.mrf.mxu1  ;;  %v3135_v33 = vpop.f32.mrf.mxu0  ;;  %v1641_v1 = vadd.f32 %v3880_v31, %v3837_v54 }
 0x277   : > { %v2048_v36 = vadd.f32 %v3135_v33, %v1842_v38  ;;  %3162 = vmatprep.mubr.msk.bf16.mxu1 %vm1325_vm8, %v2105_v24  ;;  %v2077_v57 = vmax.f32 %v2045_v46, 0.0  ;;  %v1845_v49 = vadd.f32 %v3104_v23, %v1639_v47  ;;  %v1644_v38 = vadd.f32 %v3839_v55, %v3880_v31 }
 0x278   : > { %v1740_v58 = vpop.f32.mrf.mxu1  ;;  %v1933_v10 = vpop.f32.mrf.mxu0  ;;  %3163 = vmatmul.mubr.msk.bf16.vlgmr.msra.gmra.mxu1 %vm1325_vm8, %v2106_v18  ;;  %v1642_v33 = vadd.f32 %v3880_v31, %v3841_v44  ;;  %v1647_v44 = vadd.f32 %v3843_v2, %v3880_v31 }
 0x279   : > { %v2046_v37 = vadd.f32 %v1933_v10, %v1840_v19  ;;  %v2080_v39 = vmax.f32 %v2048_v36, 0.0  ;;  %v1843_v45 = vadd.f32 %v1740_v58, %v1637_v40 }
 0x27a   : > { %v3105_v15 = vpop.f32.mrf.mxu1  ;;  %v3138_v8 = vpop.f32.mrf.mxu0 }
 0x27b   : > { %v2078_v41 = vmax.f32 %v2046_v37, 0.0  ;;  %v1846_v7 = vadd.f32 %v3105_v15, %v1640_v56  ;;  %v2108_v50 = vpack.c.bf16 %v2080_v39, %v2079_v25  ;;  %v2051_v13 = vadd.f32 %v3138_v8, %v1845_v49 }
 0x27c   : > { %v1743_v60 = vpop.f32.mrf.mxu1  ;;  %v1946_v48 = vpop.f32.mrf.mxu0  ;;  %v1645_v25 = vadd.f32 %v3880_v31, %v3845_v53 }
 0x27d   : > { %v2107_v34 = vpack.c.bf16 %v2078_v41, %v2077_v57  ;;  %v1844_v32 = vadd.f32 %v1743_v60, %v1638_v51  ;;  %v2049_v29 = vadd.f32 %v1946_v48, %v1843_v45  ;;  %v2083_v19 = vmax.f32 %v2051_v13, 0.0 }
 0x27e   : > { %v3108_v61 = vpop.f32.mrf.mxu1  ;;  %v3139_v4 = vpop.f32.mrf.mxu0  ;;  %v1648_v60 = vadd.f32 %v3847_v28, %v3880_v31 }
 0x27f   : > { %v2052_v42 = vadd.f32 %v3139_v4, %v1846_v7  ;;  %3166 = vmatprep.mubr.msk.bf16.mxu1 %vm1325_vm8, %v2107_v34  ;;  %v2081_v22 = vmax.f32 %v2049_v29, 0.0  ;;  %v1849_v18 = vadd.f32 %v3108_v61, %v1643_v26 }
 0x280   : > { %v1756_v27 = vpop.f32.mrf.mxu1  ;;  %v1949_v20 = vpop.f32.mrf.mxu0  ;;  %3167 = vmatmul.mubr.msk.bf16.gmra.mxu1 %vm1325_vm8, %v2108_v50  ;;  %v1646_v50 = vadd.f32 %v3880_v31, %v3849_v62  ;;  %v1651_v62 = vadd.f32 %v3851_v0, %v3880_v31 }
 0x281   : > { %v2050_v63 = vadd.f32 %v1949_v20, %v1844_v32  ;;  %v2084_v5 = vmax.f32 %v2052_v42, 0.0  ;;  %v1847_v11 = vadd.f32 %v1756_v27, %v1641_v1 }
 0x282   : > { %v3109_v6 = vpop.f32.mrf.mxu1  ;;  %v3142_v24 = vpop.f32.mrf.mxu0 }
 0x283   : > { %v2082_v23 = vmax.f32 %v2050_v63, 0.0  ;;  %v1850_v58 = vadd.f32 %v3109_v6, %v1644_v38  ;;  %v2055_v10 = vadd.f32 %v3142_v24, %v1849_v18  ;;  %v2110_v54 = vpack.c.bf16 %v2084_v5, %v2083_v19 }
 0x284   : > { %v1759_v46 = vpop.f32.mrf.mxu1  ;;  %v1962_v36 = vpop.f32.mrf.mxu0  ;;  %v1649_v24 = vadd.f32 %v3880_v31, %v3853_v30  ;;  %v1652_v38 = vadd.f32 %v3855_v3, %v3880_v31 }
 0x285   : > { %v2109_v35 = vpack.c.bf16 %v2082_v23, %v2081_v22  ;;  %v1848_v15 = vadd.f32 %v1759_v46, %v1642_v33  ;;  %v2053_v8 = vadd.f32 %v1962_v36, %v1847_v11  ;;  %v2087_v57 = vmax.f32 %v2055_v10, 0.0 }
 0x286   : > { %v3112_v37 = vpop.f32.mrf.mxu1  ;;  %v3143_v39 = vpop.f32.mrf.mxu0  ;;  %v1650_v36 = vadd.f32 %v3880_v31, %v3857_v59  ;;  %v1655_v59 = vadd.f32 %v3859_v9, %v3880_v31 }
 0x287   : > { %v2056_v40 = vadd.f32 %v3143_v39, %v1850_v58  ;;  %3170 = vmatprep.mubr.msk.bf16.mxu1 %vm1325_vm8, %v2109_v35  ;;  %v2085_v45 = vmax.f32 %v2053_v8, 0.0  ;;  %v1853_v34 = vadd.f32 %v3112_v37, %v1647_v44 }
 0x288   : > { %v1772_v55 = vpop.f32.mrf.mxu1  ;;  %v1965_v56 = vpop.f32.mrf.mxu0  ;;  %3171 = vmatmul.mubr.msk.bf16.gmra.mxu1 %vm1325_vm8, %v2110_v54 }
 0x289   : > { %v2088_v41 = vmax.f32 %v2056_v40, 0.0  ;;  %v2054_v47 = vadd.f32 %v1965_v56, %v1848_v15  ;;  %v1851_v4 = vadd.f32 %v1772_v55, %v1645_v25 }
 0x28a   : > { %v3113_v48 = vpop.f32.mrf.mxu1  ;;  %v3146_v51 = vpop.f32.mrf.mxu0 }
 0x28b   : > { %v2112_v7 = vpack.c.bf16 %v2088_v41, %v2087_v57  ;;  %v2086_v49 = vmax.f32 %v2054_v47, 0.0  ;;  %v1854_v29 = vadd.f32 %v3113_v48, %v1648_v60  ;;  %v2059_v42 = vadd.f32 %v3146_v51, %v1853_v34 }
 0x28c   : > { %v1775_v61 = vpop.f32.mrf.mxu1  ;;  %v1978_v2 = vpop.f32.mrf.mxu0  ;;  %v1653_v57 = vadd.f32 %v3880_v31, %v3861_v17  ;;  %v1656_v41 = vadd.f32 %v3863_v12, %v3880_v31  ;;  %v1654_v34 = vadd.f32 %v3880_v31, %v3865_v52  ;;  %v1659_v52 = vadd.f32 %v3867_v14, %v3880_v31 }
 0x28d   : > { %v2111_v32 = vpack.c.bf16 %v2086_v49, %v2085_v45  ;;  %v1852_v27 = vadd.f32 %v1775_v61, %v1646_v50  ;;  %v2057_v20 = vadd.f32 %v1978_v2, %v1851_v4  ;;  %v2091_v1 = vmax.f32 %v2059_v42, 0.0 }
 0x28e   : > { %v3116_v13 = vpop.f32.mrf.mxu1  ;;  %v3147_v53 = vpop.f32.mrf.mxu0 }
 0x28f   : > { %v2060_v28 = vadd.f32 %v3147_v53, %v1854_v29  ;;  %3174 = vmatprep.mubr.msk.bf16.mxu1 %vm1325_vm8, %v2111_v32  ;;  %v2089_v23 = vmax.f32 %v2057_v20, 0.0  ;;  %v1857_v33 = vadd.f32 %v3116_v13, %v1651_v62 }
 0x290   : > { %v1788_v26 = vpop.f32.mrf.mxu1  ;;  %v1981_v63 = vpop.f32.mrf.mxu0  ;;  %3175 = vmatmul.mubr.msk.bf16.gmra.mxu1 %vm1325_vm8, %v2112_v7 }
 0x291   : > { %v2092_v5 = vmax.f32 %v2060_v28, 0.0  ;;  %v2058_v6 = vadd.f32 %v1981_v63, %v1852_v27  ;;  %v1855_v35 = vadd.f32 %v1788_v26, %v1649_v24  ;;  %v1657_v28 = vadd.f32 %v3880_v31, %v3869_v16 }
 0x292   : > { %v3117_v22 = vpop.f32.mrf.mxu1  ;;  %v3150_v18 = vpop.f32.mrf.mxu0  ;;  %v1660_v26 = vadd.f32 %v3873_v43, %v3880_v31 }
 0x293   : > { %v2114_v19 = vpack.c.bf16 %v2092_v5, %v2091_v1  ;;  %v2090_v46 = vmax.f32 %v2058_v6, 0.0  ;;  %v1858_v10 = vadd.f32 %v3117_v22, %v1652_v38  ;;  %v2063_v54 = vadd.f32 %v3150_v18, %v1857_v33 }
 0x294   : > { %v1791_v11 = vpop.f32.mrf.mxu1  ;;  %v1994_v0 = vpop.f32.mrf.mxu0  ;;  %v1658_v38 = vadd.f32 %v3880_v31, %v3875_v21 }
 0x295   : > { %v2113_v58 = vpack.c.bf16 %v2090_v46, %v2089_v23  ;;  %v1856_v39 = vadd.f32 %v1791_v11, %v1650_v36  ;;  %v2061_v15 = vadd.f32 %v1994_v0, %v1855_v35  ;;  %v2095_v55 = vmax.f32 %v2063_v54, 0.0 }
 0x296   : > { %v3120_v37 = vpop.f32.mrf.mxu1  ;;  %v3151_v30 = vpop.f32.mrf.mxu0 }
 0x297   : > { %v2064_v3 = vadd.f32 %v3151_v30, %v1858_v10  ;;  %3178 = vmatprep.mubr.msk.bf16.mxu1 %vm1325_vm8, %v2113_v58  ;;  %v2093_v60 = vmax.f32 %v2061_v15, 0.0  ;;  %v1861_v48 = vadd.f32 %v3120_v37, %v1655_v59  ;;  %v3954_v37 = vld [vmem:[%s4091_s8] ss:$0 sm:$0xff]  ;;  %v3267_v30 = vld [vmem:[%s3388_s18 + $0x8] sm:$0xff]  }
 0x298   : > { %v1804_v8 = vpop.f32.mrf.mxu1  ;;  %v1997_v40 = vpop.f32.mrf.mxu0  ;;  %3179 = vmatmul.mubr.msk.bf16.gmra.mxu1 %vm1325_vm8, %v2114_v19 }
 0x299   : > { %v2096_v56 = vmax.f32 %v2064_v3, 0.0  ;;  %v2062_v44 = vadd.f32 %v1997_v40, %v1856_v39  ;;  %v1859_v49 = vadd.f32 %v1804_v8, %v1653_v57  ;;  %v2124_v39 = vunpack.c.l.bf16 %v3267_v30  ;;  %v3268_v8 = vld [vmem:[%s3388_s18] sm:$0xff]  }
 0x29a   : > { %v3121_v47 = vpop.f32.mrf.mxu1  ;;  %v3154_v25 = vpop.f32.mrf.mxu0  ;;  %v2122_v40 = vunpack.c.l.bf16 %v3268_v8 }
 0x29b   : > { %v2116_v51 = vpack.c.bf16 %v2096_v56, %v2095_v55  ;;  %v2094_v45 = vmax.f32 %v2062_v44, 0.0  ;;  %v1862_v61 = vadd.f32 %v3121_v47, %v1656_v41  ;;  %v2067_v2 = vadd.f32 %v3154_v25, %v1861_v48 }
 0x29c   : > { %v1807_v7 = vpop.f32.mrf.mxu1  ;;  %v2010_v9 = vpop.f32.mrf.mxu0  ;;  %v2125_v44 = vunpack.c.h.bf16 %v3267_v30 }
 0x29d   : > { %v2115_v50 = vpack.c.bf16 %v2094_v45, %v2093_v60  ;;  %v1860_v32 = vadd.f32 %v1807_v7, %v1654_v34  ;;  %v2065_v29 = vadd.f32 %v2010_v9, %v1859_v49  ;;  %v2099_v53 = vmax.f32 %v2067_v2, 0.0 }
 0x29e   : > { %v3124_v4 = vpop.f32.mrf.mxu1  ;;  %v3155_v17 = vpop.f32.mrf.mxu0  ;;  %v2123_v60 = vunpack.c.h.bf16 %v3268_v8 }
 0x29f   : > { %v2068_v12 = vadd.f32 %v3155_v17, %v1862_v61  ;;  %3182 = vmatprep.mubr.msk.bf16.mxu1 %vm1325_vm8, %v2115_v50  ;;  %v2097_v1 = vmax.f32 %v2065_v29, 0.0  ;;  %v1865_v5 = vadd.f32 %v3124_v4, %v1659_v52  ;;  %v3270_v61 = vld [vmem:[%s3388_s18 + $0x10] sm:$0xff]  }
 0x2a0   : > { %v1820_v42 = vpop.f32.mrf.mxu1  ;;  %v2013_v13 = vpop.f32.mrf.mxu0  ;;  %3183 = vmatmul.mubr.msk.bf16.gmra.mxu1 %vm1325_vm8, %v2116_v51  ;;  %v3269_v51 = vld [vmem:[%s3388_s18 + $0x18] sm:$0xff]   ;;  %v2126_v2 = vunpack.c.l.bf16 %v3270_v61 }
 0x2a1   : > { %v2100_v27 = vmax.f32 %v2068_v12, 0.0  ;;  %v2066_v20 = vadd.f32 %v2013_v13, %v1860_v32  ;;  %v1863_v18 = vadd.f32 %v1820_v42, %v1657_v28  ;;  %v2128_v45 = vunpack.c.l.bf16 %v3269_v51 }
 0x2a2   : > { %v3125_v63 = vpop.f32.mrf.mxu1  ;;  %v3158_v62 = vpop.f32.mrf.mxu0  ;;  %v2129_v42 = vunpack.c.h.bf16 %v3269_v51  ;;  %v2127_v28 = vunpack.c.h.bf16 %v3270_v61 }
 0x2a3   : > { %v2118_v6 = vpack.c.bf16 %v2100_v27, %v2099_v53  ;;  %v2098_v24 = vmax.f32 %v2066_v20, 0.0  ;;  %v1866_v33 = vadd.f32 %v3125_v63, %v1660_v26  ;;  %v2071_v19 = vadd.f32 %v3158_v62, %v1865_v5 }
 0x2a4   : > { %v1823_v22 = vpop.f32.mrf.mxu1  ;;  %v2026_v14 = vpop.f32.mrf.mxu0 }
 0x2a5   : > { %v2117_v23 = vpack.c.bf16 %v2098_v24, %v2097_v1  ;;  %v1864_v16 = vadd.f32 %v1823_v22, %v1658_v38  ;;  %v2069_v36 = vadd.f32 %v2026_v14, %v1863_v18  ;;  %v2103_v0 = vmax.f32 %v2071_v19, 0.0 }
 0x2a6   : > { %v3159_v46 = vpop.f32.mrf.mxu0 }
 0x2a7   : > { %v2072_v43 = vadd.f32 %v3159_v46, %v1866_v33  ;;  %3186 = vmatprep.mubr.msk.bf16.mxu1 %vm1325_vm8, %v2117_v23  ;;  %v2101_v31 = vmax.f32 %v2069_v36, 0.0  ;;  %v3272_v33 = vld [vmem:[%s3388_s18 + $0x20] sm:$0xff]  }
 0x2a8   : > { %v2029_v11 = vpop.f32.mrf.mxu0  ;;  %3187 = vmatmul.mubr.msk.bf16.gmra.mxu1 %vm1325_vm8, %v2118_v6  ;;  %v3271_v6 = vld [vmem:[%s3388_s18 + $0x28] sm:$0xff]   ;;  %v2130_v19 = vunpack.c.l.bf16 %v3272_v33 }
 0x2a9   : > { %v2104_v35 = vmax.f32 %v2072_v43, 0.0  ;;  %v2070_v21 = vadd.f32 %v2029_v11, %v1864_v16  ;;  %v2132_v24 = vunpack.c.l.bf16 %v3271_v6 }
 0x2ab   : > { %v2120_v58 = vpack.c.bf16 %v2104_v35, %v2103_v0  ;;  %v2102_v10 = vmax.f32 %v2070_v21, 0.0  ;;  %v2133_v0 = vunpack.c.h.bf16 %v3271_v6 }
 0x2ad   : > { %v2119_v54 = vpack.c.bf16 %v2102_v10, %v2101_v31 }
 0x2af   : > { %3190 = vmatprep.mubr.msk.bf16.mxu1 %vm1325_vm8, %v2119_v54  ;;  %v2131_v54 = vunpack.c.h.bf16 %v3272_v33 }
 0x2b0   : > { %3191 = vmatmul.mubr.msk.bf16.gmra.mxu1 %vm1325_vm8, %v2120_v58 }
 0x338   : > { %v3164_v15 = vpop.f32.mrf.mxu1 }
 0x339   : > { %v2256_v3 = vadd.f32 %v3164_v15, %v3954_v37 }
 0x33a   : > { %v2247_v59 = vpop.f32.mrf.mxu1 }
 0x33b   : > { %v2376_v55 = vadd.f32 %v2256_v3, %v2124_v39  ;;  %v2248_v56 = vadd.f32 %v3954_v37, %v2247_v59 }
 0x33c   : > { %v3165_v57 = vpop.f32.mrf.mxu1 }
 0x33d   : > { %v2408_v41 = vmax.f32 %v2376_v55, 0.0  ;;  %v2374_v47 = vadd.f32 %v2248_v56, %v2122_v40  ;;  %v2259_v25 = vadd.f32 %v3165_v57, %v3954_v37  ;;  %v3273_v40 = vld [vmem:[%s3388_s18 + $0x38] sm:$0xff]  }
 0x33e   : > { %v2250_v48 = vpop.f32.mrf.mxu1  ;;  %v2136_v59 = vunpack.c.l.bf16 %v3273_v40 }
 0x33f   : > { %v2902_v34 = vpack.c.bf16 %v2408_v41, %v2408_v41  ;;  %v2406_v7 = vmax.f32 %v2374_v47, 0.0  ;;  %v2377_v9 = vadd.f32 %v2259_v25, %v2125_v44  ;;  %v2251_v49 = vadd.f32 %v3954_v37, %v2250_v48  ;;  %v3274_v47 = vld [vmem:[%s3388_s18 + $0x30] sm:$0xff]  }
 0x340   : > { %v3168_v50 = vpop.f32.mrf.mxu1  ;;  %v2134_v25 = vunpack.c.l.bf16 %v3274_v47 }
 0x341   : > { %2569 = vst.msk [vmem:[%s3965_s28 + $0x8] sm:$0xf] %vm2566_vm12, %v2902_v34  ;;  %v2900_v4 = vpack.c.bf16 %v2406_v7, %v2406_v7  ;;  %v2409_v17 = vmax.f32 %v2377_v9, 0.0  ;;  %v2375_v32 = vadd.f32 %v2251_v49, %v2123_v60  ;;  %v2272_v29 = vadd.f32 %v3168_v50, %v3954_v37 }
 0x342   : > { %v2263_v12 = vpop.f32.mrf.mxu1  ;;  %v2137_v7 = vunpack.c.h.bf16 %v3273_v40 }
 0x343   : > { %2567 = vst.msk [vmem:[%s3965_s28] sm:$0xf] %vm2566_vm12, %v2900_v4  ;;  %v2903_v13 = vpack.c.bf16 %v2409_v17, %v2409_v17  ;;  %v2407_v52 = vmax.f32 %v2375_v32, 0.0  ;;  %v2380_v53 = vadd.f32 %v2272_v29, %v2128_v45  ;;  %v2264_v27 = vadd.f32 %v3954_v37, %v2263_v12 }
 0x344   : > { %v3169_v20 = vpop.f32.mrf.mxu1  ;;  %v2135_v4 = vunpack.c.h.bf16 %v3274_v47 }
 0x345   : > { %2570 = vst.msk [vmem:[%s3965_s28 + $0xc] sm:$0xf] %vm2566_vm12, %v2903_v13  ;;  %v2901_v26 = vpack.c.bf16 %v2407_v52, %v2407_v52  ;;  %v2412_v63 = vmax.f32 %v2380_v53, 0.0  ;;  %v2378_v62 = vadd.f32 %v2264_v27, %v2126_v2  ;;  %v2275_v1 = vadd.f32 %v3169_v20, %v3954_v37  ;;  %v3275_v13 = vld [vmem:[%s3388_s18 + $0x48] sm:$0xff]  }
 0x346   : > { %v2266_v5 = vpop.f32.mrf.mxu1  ;;  %v2140_v52 = vunpack.c.l.bf16 %v3275_v13 }
 0x347   : > { %2568 = vst.msk [vmem:[%s3965_s28 + $0x4] sm:$0xf] %vm2566_vm12, %v2901_v26  ;;  %v2906_v38 = vpack.c.bf16 %v2412_v63, %v2412_v63  ;;  %v2410_v22 = vmax.f32 %v2378_v62, 0.0  ;;  %v2381_v14 = vadd.f32 %v2275_v1, %v2129_v42  ;;  %v2267_v18 = vadd.f32 %v3954_v37, %v2266_v5  ;;  %v3276_v63 = vld [vmem:[%s3388_s18 + $0x40] sm:$0xff]  }
 0x348   : > { %v3172_v23 = vpop.f32.mrf.mxu1  ;;  %v2138_v62 = vunpack.c.l.bf16 %v3276_v63 }
 0x349   : > { %2573 = vst.msk [vmem:[%s3965_s28 + $0x18] sm:$0xf] %vm2566_vm12, %v2906_v38  ;;  %v2904_v46 = vpack.c.bf16 %v2410_v22, %v2410_v22  ;;  %v2413_v16 = vmax.f32 %v2381_v14, 0.0  ;;  %v2379_v36 = vadd.f32 %v2267_v18, %v2127_v28  ;;  %v2288_v43 = vadd.f32 %v3172_v23, %v3954_v37 }
 0x34a   : > { %v2279_v11 = vpop.f32.mrf.mxu1  ;;  %v2141_v22 = vunpack.c.h.bf16 %v3275_v13 }
 0x34b   : > { %2571 = vst.msk [vmem:[%s3965_s28 + $0x10] sm:$0xf] %vm2566_vm12, %v2904_v46  ;;  %v2907_v35 = vpack.c.bf16 %v2413_v16, %v2413_v16  ;;  %v2411_v21 = vmax.f32 %v2379_v36, 0.0  ;;  %v2384_v31 = vadd.f32 %v2288_v43, %v2132_v24  ;;  %v2280_v58 = vadd.f32 %v3954_v37, %v2279_v11 }
 0x34c   : > { %v3173_v10 = vpop.f32.mrf.mxu1  ;;  %v2139_v46 = vunpack.c.h.bf16 %v3276_v63 }
 0x34d   : > { %2574 = vst.msk [vmem:[%s3965_s28 + $0x1c] sm:$0xf] %vm2566_vm12, %v2907_v35  ;;  %v2905_v30 = vpack.c.bf16 %v2411_v21, %v2411_v21  ;;  %v2416_v39 = vmax.f32 %v2384_v31, 0.0  ;;  %v2382_v15 = vadd.f32 %v2280_v58, %v2130_v19  ;;  %v2291_v3 = vadd.f32 %v3173_v10, %v3954_v37  ;;  %v3277_v35 = vld [vmem:[%s3388_s18 + $0x58] sm:$0xff]  }
 0x34e   : > { %v2282_v8 = vpop.f32.mrf.mxu1  ;;  %v2144_v21 = vunpack.c.l.bf16 %v3277_v35 }
 0x34f   : > { %2572 = vst.msk [vmem:[%s3965_s28 + $0x14] sm:$0xf] %vm2566_vm12, %v2905_v30  ;;  %v2910_v55 = vpack.c.bf16 %v2416_v39, %v2416_v39  ;;  %v2414_v56 = vmax.f32 %v2382_v15, 0.0  ;;  %v2385_v44 = vadd.f32 %v2291_v3, %v2133_v0  ;;  %v2283_v57 = vadd.f32 %v3954_v37, %v2282_v8  ;;  %v3278_v39 = vld [vmem:[%s3388_s18 + $0x50] sm:$0xff]  }
 0x350   : > { %v3176_v41 = vpop.f32.mrf.mxu1  ;;  %v2142_v15 = vunpack.c.l.bf16 %v3278_v39 }
 0x351   : > { %2577 = vst.msk [vmem:[%s3965_s28 + $0x28] sm:$0xf] %vm2566_vm12, %v2910_v55  ;;  %v2908_v60 = vpack.c.bf16 %v2414_v56, %v2414_v56  ;;  %v2417_v48 = vmax.f32 %v2385_v44, 0.0  ;;  %v2383_v51 = vadd.f32 %v2283_v57, %v2131_v54  ;;  %v2304_v45 = vadd.f32 %v3176_v41, %v3954_v37 }
 0x352   : > { %v2295_v34 = vpop.f32.mrf.mxu1  ;;  %v2145_v56 = vunpack.c.h.bf16 %v3277_v35 }
 0x353   : > { %2575 = vst.msk [vmem:[%s3965_s28 + $0x20] sm:$0xf] %vm2566_vm12, %v2908_v60  ;;  %v2911_v9 = vpack.c.bf16 %v2417_v48, %v2417_v48  ;;  %v2415_v49 = vmax.f32 %v2383_v51, 0.0  ;;  %v2388_v50 = vadd.f32 %v2304_v45, %v2136_v59  ;;  %v2296_v61 = vadd.f32 %v3954_v37, %v2295_v34 }
 0x354   : > { %v3177_v2 = vpop.f32.mrf.mxu1  ;;  %v2143_v60 = vunpack.c.h.bf16 %v3278_v39 }
 0x355   : > { %2578 = vst.msk [vmem:[%s3965_s28 + $0x2c] sm:$0xf] %vm2566_vm12, %v2911_v9  ;;  %v2909_v17 = vpack.c.bf16 %v2415_v49, %v2415_v49  ;;  %v2420_v32 = vmax.f32 %v2388_v50, 0.0  ;;  %v2386_v29 = vadd.f32 %v2296_v61, %v2134_v25  ;;  %v2307_v12 = vadd.f32 %v3177_v2, %v3954_v37  ;;  %v3279_v9 = vld [vmem:[%s3388_s18 + $0x68] sm:$0xff]  }
 0x356   : > { %v2298_v42 = vpop.f32.mrf.mxu1  ;;  %v2148_v49 = vunpack.c.l.bf16 %v3279_v9 }
 0x357   : > { %2576 = vst.msk [vmem:[%s3965_s28 + $0x24] sm:$0xf] %vm2566_vm12, %v2909_v17  ;;  %v2914_v53 = vpack.c.bf16 %v2420_v32, %v2420_v32  ;;  %v2418_v27 = vmax.f32 %v2386_v29, 0.0  ;;  %v2389_v20 = vadd.f32 %v2307_v12, %v2137_v7  ;;  %v2299_v28 = vadd.f32 %v3954_v37, %v2298_v42  ;;  %v3280_v32 = vld [vmem:[%s3388_s18 + $0x60] sm:$0xff]  }
 0x358   : > { %v3180_v26 = vpop.f32.mrf.mxu1  ;;  %v2146_v29 = vunpack.c.l.bf16 %v3280_v32 }
 0x359   : > { %2581 = vst.msk [vmem:[%s3965_s28 + $0x38] sm:$0xf] %vm2566_vm12, %v2914_v53  ;;  %v2912_v1 = vpack.c.bf16 %v2418_v27, %v2418_v27  ;;  %v2421_v5 = vmax.f32 %v2389_v20, 0.0  ;;  %v2387_v6 = vadd.f32 %v2299_v28, %v2135_v4  ;;  %v2320_v24 = vadd.f32 %v3180_v26, %v3954_v37 }
 0x35a   : > { %v2311_v38 = vpop.f32.mrf.mxu1  ;;  %v2149_v27 = vunpack.c.h.bf16 %v3279_v9 }
 0x35b   : > { %2579 = vst.msk [vmem:[%s3965_s28 + $0x30] sm:$0xf] %vm2566_vm12, %v2912_v1  ;;  %v2915_v14 = vpack.c.bf16 %v2421_v5, %v2421_v5  ;;  %v2419_v18 = vmax.f32 %v2387_v6, 0.0  ;;  %v2392_v23 = vadd.f32 %v2320_v24, %v2140_v52  ;;  %v2312_v33 = vadd.f32 %v3954_v37, %v2311_v38 }
 0x35c   : > { %v3181_v19 = vpop.f32.mrf.mxu1  ;;  %v2147_v1 = vunpack.c.h.bf16 %v3280_v32 }
 0x35d   : > { %2582 = vst.msk [vmem:[%s3965_s28 + $0x3c] sm:$0xf] %vm2566_vm12, %v2915_v14  ;;  %v2913_v16 = vpack.c.bf16 %v2419_v18, %v2419_v18  ;;  %v2424_v36 = vmax.f32 %v2392_v23, 0.0  ;;  %v2390_v43 = vadd.f32 %v2312_v33, %v2138_v62  ;;  %v2323_v11 = vadd.f32 %v3181_v19, %v3954_v37  ;;  %v3281_v14 = vld [vmem:[%s3388_s18 + $0x78] sm:$0xff]  }
 0x35e   : > { %v2314_v0 = vpop.f32.mrf.mxu1  ;;  %v2152_v18 = vunpack.c.l.bf16 %v3281_v14 }
 0x35f   : > { %2580 = vst.msk [vmem:[%s3965_s28 + $0x34] sm:$0xf] %vm2566_vm12, %v2913_v16  ;;  %v2918_v31 = vpack.c.bf16 %v2424_v36, %v2424_v36  ;;  %v2422_v58 = vmax.f32 %v2390_v43, 0.0  ;;  %v2393_v10 = vadd.f32 %v2323_v11, %v2141_v22  ;;  %v2315_v54 = vadd.f32 %v3954_v37, %v2314_v0  ;;  %v3282_v36 = vld [vmem:[%s3388_s18 + $0x70] sm:$0xff]  }
 0x360   : > { %v3184_v30 = vpop.f32.mrf.mxu1  ;;  %v2150_v43 = vunpack.c.l.bf16 %v3282_v36 }
 0x361   : > { %2585 = vst.msk [vmem:[%s3965_s28 + $0x48] sm:$0xf] %vm2566_vm12, %v2918_v31  ;;  %v2916_v3 = vpack.c.bf16 %v2422_v58, %v2422_v58  ;;  %v2425_v8 = vmax.f32 %v2393_v10, 0.0  ;;  %v2391_v40 = vadd.f32 %v2315_v54, %v2139_v46  ;;  %v2336_v59 = vadd.f32 %v3184_v30, %v3954_v37 }
 0x362   : > { %v2327_v55 = vpop.f32.mrf.mxu1  ;;  %v2153_v58 = vunpack.c.h.bf16 %v3281_v14 }
 0x363   : > { %2583 = vst.msk [vmem:[%s3965_s28 + $0x40] sm:$0xf] %vm2566_vm12, %v2916_v3  ;;  %v2919_v44 = vpack.c.bf16 %v2425_v8, %v2425_v8  ;;  %v2423_v57 = vmax.f32 %v2391_v40, 0.0  ;;  %v2396_v41 = vadd.f32 %v2336_v59, %v2144_v21  ;;  %v2328_v47 = vadd.f32 %v3954_v37, %v2327_v55 }
 0x364   : > { %v3185_v25 = vpop.f32.mrf.mxu1  ;;  %v2151_v3 = vunpack.c.h.bf16 %v3282_v36 }
 0x365   : > { %2586 = vst.msk [vmem:[%s3965_s28 + $0x4c] sm:$0xf] %vm2566_vm12, %v2919_v44  ;;  %v2917_v48 = vpack.c.bf16 %v2423_v57, %v2423_v57  ;;  %v2428_v51 = vmax.f32 %v2396_v41, 0.0  ;;  %v2394_v45 = vadd.f32 %v2328_v47, %v2142_v15  ;;  %v2339_v34 = vadd.f32 %v3185_v25, %v3954_v37 }
 0x366   : > { %v2330_v7 = vpop.f32.mrf.mxu1 }
 0x367   : > { %2584 = vst.msk [vmem:[%s3965_s28 + $0x44] sm:$0xf] %vm2566_vm12, %v2917_v48  ;;  %v2922_v50 = vpack.c.bf16 %v2428_v51, %v2428_v51  ;;  %v2426_v61 = vmax.f32 %v2394_v45, 0.0  ;;  %v2397_v2 = vadd.f32 %v2339_v34, %v2145_v56  ;;  %v2331_v4 = vadd.f32 %v3954_v37, %v2330_v7 }
 0x368   : > { %v3188_v17 = vpop.f32.mrf.mxu1 }
 0x369   : > { %2589 = vst.msk [vmem:[%s3965_s28 + $0x58] sm:$0xf] %vm2566_vm12, %v2922_v50  ;;  %v2920_v12 = vpack.c.bf16 %v2426_v61, %v2426_v61  ;;  %v2429_v42 = vmax.f32 %v2397_v2, 0.0  ;;  %v2395_v13 = vadd.f32 %v2331_v4, %v2143_v60  ;;  %v2352_v52 = vadd.f32 %v3188_v17, %v3954_v37 }
 0x36a   : > { %v2343_v53 = vpop.f32.mrf.mxu1 }
 0x36b   : > { %2587 = vst.msk [vmem:[%s3965_s28 + $0x50] sm:$0xf] %vm2566_vm12, %v2920_v12  ;;  %v2923_v20 = vpack.c.bf16 %v2429_v42, %v2429_v42  ;;  %v2427_v28 = vmax.f32 %v2395_v13, 0.0  ;;  %v2400_v26 = vadd.f32 %v2352_v52, %v2148_v49  ;;  %v2344_v63 = vadd.f32 %v3954_v37, %v2343_v53 }
 0x36c   : > { %v3189_v62 = vpop.f32.mrf.mxu1 }
 0x36d   : > { %2590 = vst.msk [vmem:[%s3965_s28 + $0x5c] sm:$0xf] %vm2566_vm12, %v2923_v20  ;;  %v2921_v5 = vpack.c.bf16 %v2427_v28, %v2427_v28  ;;  %v2432_v6 = vmax.f32 %v2400_v26, 0.0  ;;  %v2398_v24 = vadd.f32 %v2344_v63, %v2146_v29  ;;  %v2355_v38 = vadd.f32 %v3189_v62, %v3954_v37 }
 0x36e   : > { %v2346_v22 = vpop.f32.mrf.mxu1 }
 0x36f   : > { %2588 = vst.msk [vmem:[%s3965_s28 + $0x54] sm:$0xf] %vm2566_vm12, %v2921_v5  ;;  %v2926_v23 = vpack.c.bf16 %v2432_v6, %v2432_v6  ;;  %v2430_v33 = vmax.f32 %v2398_v24, 0.0  ;;  %v2401_v19 = vadd.f32 %v2355_v38, %v2149_v27  ;;  %v2347_v46 = vadd.f32 %v3954_v37, %v2346_v22 }
 0x370   : > { %v3192_v16 = vpop.f32.mrf.mxu1 }
 0x371   : > { %2593 = vst.msk [vmem:[%s3965_s28 + $0x68] sm:$0xf] %vm2566_vm12, %v2926_v23  ;;  %v2924_v11 = vpack.c.bf16 %v2430_v33, %v2430_v33  ;;  %v2433_v0 = vmax.f32 %v2401_v19, 0.0  ;;  %v2399_v35 = vadd.f32 %v2347_v46, %v2147_v1  ;;  %v2368_v21 = vadd.f32 %v3192_v16, %v3954_v37 }
 0x372   : > { %v2359_v31 = vpop.f32.mrf.mxu1 }
 0x373   : > { %2591 = vst.msk [vmem:[%s3965_s28 + $0x60] sm:$0xf] %vm2566_vm12, %v2924_v11  ;;  %v2927_v10 = vpack.c.bf16 %v2433_v0, %v2433_v0  ;;  %v2431_v54 = vmax.f32 %v2399_v35, 0.0  ;;  %v2404_v30 = vadd.f32 %v2368_v21, %v2152_v18  ;;  %v2360_v39 = vadd.f32 %v3954_v37, %v2359_v31 }
 0x374   : > { %v3193_v15 = vpop.f32.mrf.mxu1 }
 0x375   : > { %2594 = vst.msk [vmem:[%s3965_s28 + $0x6c] sm:$0xf] %vm2566_vm12, %v2927_v10  ;;  %v2925_v8 = vpack.c.bf16 %v2431_v54, %v2431_v54  ;;  %v2436_v40 = vmax.f32 %v2404_v30, 0.0  ;;  %v2402_v59 = vadd.f32 %v2360_v39, %v2150_v43  ;;  %v2371_v55 = vadd.f32 %v3193_v15, %v3954_v37 }
 0x376   : > { %v2362_v56 = vpop.f32.mrf.mxu1 }
 0x377   : > { %2592 = vst.msk [vmem:[%s3965_s28 + $0x64] sm:$0xf] %vm2566_vm12, %v2925_v8  ;;  %v2930_v44 = vpack.c.bf16 %v2436_v40, %v2436_v40  ;;  %v2434_v57 = vmax.f32 %v2402_v59, 0.0  ;;  %v2405_v41 = vadd.f32 %v2371_v55, %v2153_v58  ;;  %v2363_v47 = vadd.f32 %v3954_v37, %v2362_v56 }
 0x379   : > { %2597 = vst.msk [vmem:[%s3965_s28 + $0x78] sm:$0xf] %vm2566_vm12, %v2930_v44  ;;  %v2928_v25 = vpack.c.bf16 %v2434_v57, %v2434_v57  ;;  %v2437_v60 = vmax.f32 %v2405_v41, 0.0  ;;  %v2403_v48 = vadd.f32 %v2363_v47, %v2151_v3 }
 0x37b   : > { %2595 = vst.msk [vmem:[%s3965_s28 + $0x70] sm:$0xf] %vm2566_vm12, %v2928_v25  ;;  %v2931_v51 = vpack.c.bf16 %v2437_v60, %v2437_v60  ;;  %v2435_v45 = vmax.f32 %v2403_v48, 0.0 }
 0x37d   : > { %2598 = vst.msk [vmem:[%s3965_s28 + $0x7c] sm:$0xf] %vm2566_vm12, %v2931_v51  ;;  %v2929_v34 = vpack.c.bf16 %v2435_v45, %v2435_v45 }
 0x37f   : > { %2596 = vst.msk [vmem:[%s3965_s28 + $0x74] sm:$0xf] %vm2566_vm12, %v2929_v34 }
 0x380 PF: > { %s19_s11 = sadd.s32 1, %s3305_s11   ;;  %s4097_s30 = smov %s3301_s10 }
 0x381   : > { %p16_p5 = scmp.ge.s32.totalorder %s19_s11, 4   ;;  %s4098_s10 = smov %s4100_s12 }
 0x383   :  { %18 = sbr.rel (!%p16_p5) target bundleno = 2 (0x2), region = 94 }

</bundles_post_ra>
